<compile_context>
chip_gen: v5e
topology: v5e:2x2
jax: 0.10.0
libtpu: 0.0.40
codegen_flags: <defaults>
</compile_context>

<pallas_src>
import functools

import jax
import jax.numpy as jnp
import numpy as np
from jax.experimental import pallas as pl
from jax.experimental.pallas import tpu as pltpu


def _lstm_head_kernel(x_ref, wih_ref, b_ref, whh_ref, wout_ref, bout_ref,
                      h0_ref, c0_ref,
                      out_ref, h_out_ref, c_out_ref,
                      xg_sc,
                      *, seq_len, hp):
    Hp = hp

    # ---- hoisted input->hidden projection for ALL timesteps ------------------
    # One (T, E) @ (E, 4*Hp) matmul with the pre-summed bias folded in; the
    # recurrence below only does the unavoidable h @ W_hh part.
    xg_sc[...] = (jnp.dot(x_ref[...], wih_ref[...],
                          preferred_element_type=jnp.float32)
                  + b_ref[...])

    h = h0_ref[...]        # (1, Hp); lanes [H, Hp) are zero
    c = c0_ref[...]        # (1, Hp)

    # ---- recurrence: fully unrolled at trace time (seq_len is static) --------
    # h/c stay register-resident; one MXU op per step; vreg-aligned gate slices.
    for t in range(seq_len):
        gates = (jnp.dot(h, whh_ref[...], preferred_element_type=jnp.float32)
                 + xg_sc[pl.ds(t, 1), :])                 # (1, 4*Hp)
        i_g = jax.nn.sigmoid(gates[:, 0 * Hp:1 * Hp])     # 128-lane aligned
        f_g = jax.nn.sigmoid(gates[:, 1 * Hp:2 * Hp])
        g_g = jnp.tanh(gates[:, 2 * Hp:3 * Hp])
        o_g = jax.nn.sigmoid(gates[:, 3 * Hp:4 * Hp])
        c = f_g * c + i_g * g_g                           # padded lanes stay 0
        h = o_g * jnp.tanh(c)

    # ---- epilogue: relu(linear(output[-1])) + final state --------------------
    logits = (jnp.dot(h, wout_ref[...], preferred_element_type=jnp.float32)
              + bout_ref[...])                            # (1, Cp) lane-dense
    out_ref[...] = jnp.maximum(logits, 0.0)
    h_out_ref[...] = h
    c_out_ref[...] = c


def _round_up(x, m):
    return ((x + m - 1) // m) * m


def rnn_forward(token_ids, hidden, params):
    """Pallas forward. token_ids: (T,) int; hidden: ((1,1,H),(1,1,H))."""
    emb = params["embedding"]            # (V, E)
    w_ih = params["w_ih"]                # (4H, E)  torch weight_ih_l0
    w_hh = params["w_hh"]                # (4H, H)  torch weight_hh_l0
    b_ih = params["b_ih"]                # (4H,)
    b_hh = params["b_hh"]                # (4H,)
    w_out = params["w_out"]              # (C, H)   torch linear1.weight
    b_out = params["b_out"]              # (C,)

    V, E = emb.shape
    H = w_hh.shape[1]
    C = w_out.shape[0]
    T = int(token_ids.shape[0])

    Hp = _round_up(H, 128)               # per-gate lane block (vreg aligned)
    Cp = _round_up(C, 128)               # lane-dense classifier output

    h0, c0 = hidden
    h0 = jnp.pad(h0.reshape(1, H).astype(jnp.float32), ((0, 0), (0, Hp - H)))
    c0 = jnp.pad(c0.reshape(1, H).astype(jnp.float32), ((0, 0), (0, Hp - H)))

    def gate_pad_cols(w):
        # (rows, 4H) -> (rows, 4*Hp): each gate's H columns land at the start of
        # its own 128-lane block, zero elsewhere.
        r = w.shape[0]
        w4 = jnp.pad(w.reshape(r, 4, H), ((0, 0), (0, 0), (0, Hp - H)))
        return w4.reshape(r, 4 * Hp)

    # Glue (layout plumbing stays in XLA):
    #  - embedding gather keeps the (V,E) table out of the kernel entirely,
    #  - weights pre-transposed / gate-block padded, biases pre-summed.
    x = jnp.take(emb, token_ids.astype(jnp.int32), axis=0).astype(jnp.float32)  # (T, E)
    wih_p = gate_pad_cols(jnp.transpose(w_ih))                                  # (E, 4*Hp)
    whh_p = jnp.pad(gate_pad_cols(jnp.transpose(w_hh)),
                    ((0, Hp - H), (0, 0)))                                      # (Hp, 4*Hp)
    b_p = gate_pad_cols((b_ih + b_hh).reshape(1, 4 * H))                        # (1, 4*Hp)
    wout_p = jnp.pad(jnp.transpose(w_out), ((0, Hp - H), (0, Cp - C)))          # (Hp, Cp)
    bout_p = jnp.pad(b_out.reshape(1, C), ((0, 0), (0, Cp - C)))                # (1, Cp)

    kernel = functools.partial(_lstm_head_kernel, seq_len=T, hp=Hp)

    grid_spec = pltpu.PrefetchScalarGridSpec(
        num_scalar_prefetch=0,
        grid=(1,),
        in_specs=[
            pl.BlockSpec((T, E), lambda i: (0, 0)),           # gathered embeddings
            pl.BlockSpec((E, 4 * Hp), lambda i: (0, 0)),      # W_ih^T (gate-padded)
            pl.BlockSpec((1, 4 * Hp), lambda i: (0, 0)),      # b_ih + b_hh (pre-summed)
            pl.BlockSpec((Hp, 4 * Hp), lambda i: (0, 0)),     # W_hh^T (padded)
            pl.BlockSpec((Hp, Cp), lambda i: (0, 0)),         # W_out^T (padded)
            pl.BlockSpec((1, Cp), lambda i: (0, 0)),          # b_out (padded)
            pl.BlockSpec((1, Hp), lambda i: (0, 0)),          # h0 (padded)
            pl.BlockSpec((1, Hp), lambda i: (0, 0)),          # c0 (padded)
        ],
        out_specs=[
            pl.BlockSpec((1, Cp), lambda i: (0, 0)),          # relu(linear(out[-1]))
            pl.BlockSpec((1, Hp), lambda i: (0, 0)),          # h_T
            pl.BlockSpec((1, Hp), lambda i: (0, 0)),          # c_T
        ],
        scratch_shapes=[pltpu.VMEM((T, 4 * Hp), jnp.float32)],   # hoisted X@W_ih^T + b
    )

    out_p, h_p, c_p = pl.pallas_call(
        kernel,
        grid_spec=grid_spec,
        out_shape=(jax.ShapeDtypeStruct((1, Cp), jnp.float32),
                   jax.ShapeDtypeStruct((1, Hp), jnp.float32),
                   jax.ShapeDtypeStruct((1, Hp), jnp.float32)),
        compiler_params=pltpu.CompilerParams(
            dimension_semantics=("arbitrary",)),
    )(x, wih_p, b_p, whh_p, wout_p, bout_p, h0, c0)

    out = out_p[:, :C]
    h_n = h_p[:, :H].reshape(1, 1, H)
    c_n = c_p[:, :H].reshape(1, 1, H)
    return out, (h_n, c_n)


def rnn_forward_ref(token_ids, hidden, params):
    """Pure-JAX reference matching torch semantics (for correctness check)."""
    emb = params["embedding"][token_ids]         # (T, E)
    h, c = hidden
    H = h.shape[-1]
    h = h.reshape(1, H)
    c = c.reshape(1, H)
    w_ih, w_hh = params["w_ih"], params["w_hh"]
    b = params["b_ih"] + params["b_hh"]
    for t in range(emb.shape[0]):
        x = emb[t:t + 1]
        gates = x @ w_ih.T + h @ w_hh.T + b
        i = jax.nn.sigmoid(gates[:, :H])
        f = jax.nn.sigmoid(gates[:, H:2 * H])
        g = jnp.tanh(gates[:, 2 * H:3 * H])
        o = jax.nn.sigmoid(gates[:, 3 * H:4 * H])
        c = f * c + i * g
        h = o * jnp.tanh(c)
    out = jnp.maximum(h @ params["w_out"].T + params["b_out"], 0.0)
    return out, (h.reshape(1, 1, H), c.reshape(1, 1, H))


if __name__ == "__main__":
    # small shapes consistent with the module
    V, E, H, C, T = 64, 16, 32, 8, 8   # vocab, embed, hidden, n_categories, seq len

    key = jax.random.PRNGKey(0)
    ks = jax.random.split(key, 8)
    s = 0.1
    params = {
        "embedding": jax.random.uniform(ks[0], (V, E), jnp.float32, -s, s),
        "w_ih": jax.random.uniform(ks[1], (4 * H, E), jnp.float32, -s, s),
        "w_hh": jax.random.uniform(ks[2], (4 * H, H), jnp.float32, -s, s),
        "b_ih": jax.random.uniform(ks[3], (4 * H,), jnp.float32, -s, s),
        "b_hh": jax.random.uniform(ks[4], (4 * H,), jnp.float32, -s, s),
        "w_out": jax.random.uniform(ks[5], (C, H), jnp.float32, -s, s),
        "b_out": jax.random.uniform(ks[6], (C,), jnp.float32, -s, s),
    }
    token_ids = jax.random.randint(ks[7], (T,), 0, V, jnp.int32)   # `input`
    hidden = (jnp.zeros((1, 1, H), jnp.float32),                   # initHidden()
              jnp.zeros((1, 1, H), jnp.float32))

    out, (h_n, c_n) = rnn_forward(token_ids, hidden, params)
    jax.block_until_ready((out, h_n, c_n))

    out_r, (h_r, c_r) = rnn_forward_ref(token_ids, hidden, params)
    assert np.allclose(np.asarray(out), np.asarray(out_r), atol=1e-5)
    assert np.allclose(np.asarray(h_n), np.asarray(h_r), atol=1e-5)
    assert np.allclose(np.asarray(c_n), np.asarray(c_r), atol=1e-5)

    print("KERNEL_OK")
</pallas_src>

<mosaic_0001>
module attributes {stable_mosaic.version = 11 : i64} {
  func.func @_lstm_head_kernel(%arg0: i32, %arg1: memref<8x16xf32, #tpu.memory_space<vmem>>, %arg2: memref<16x512xf32, #tpu.memory_space<vmem>>, %arg3: memref<1x512xf32, #tpu.memory_space<vmem>>, %arg4: memref<128x512xf32, #tpu.memory_space<vmem>>, %arg5: memref<128x128xf32, #tpu.memory_space<vmem>>, %arg6: memref<1x128xf32, #tpu.memory_space<vmem>>, %arg7: memref<1x128xf32, #tpu.memory_space<vmem>>, %arg8: memref<1x128xf32, #tpu.memory_space<vmem>>, %arg9: memref<1x128xf32, #tpu.memory_space<vmem>>, %arg10: memref<1x128xf32, #tpu.memory_space<vmem>>, %arg11: memref<1x128xf32, #tpu.memory_space<vmem>>, %arg12: memref<8x512xf32, #tpu.memory_space<vmem>>) attributes {dimension_semantics = [#tpu.dimension_semantics<arbitrary>], iteration_bounds = array<i64: 1>, scalar_prefetch = 0 : i64, scratch_operands = 1 : i64, tpu.core_type = #tpu.core_type<tc>, window_params = [{pipeline_mode = #tpu.pipeline_mode<synchronous>, transform_indices = @transform_0, window_bounds = array<i64: 8, 16>}, {pipeline_mode = #tpu.pipeline_mode<synchronous>, transform_indices = @transform_1, window_bounds = array<i64: 16, 512>}, {pipeline_mode = #tpu.pipeline_mode<synchronous>, transform_indices = @transform_2, window_bounds = array<i64: 1, 512>}, {pipeline_mode = #tpu.pipeline_mode<synchronous>, transform_indices = @transform_3, window_bounds = array<i64: 128, 512>}, {pipeline_mode = #tpu.pipeline_mode<synchronous>, transform_indices = @transform_4, window_bounds = array<i64: 128, 128>}, {pipeline_mode = #tpu.pipeline_mode<synchronous>, transform_indices = @transform_5, window_bounds = array<i64: 1, 128>}, {pipeline_mode = #tpu.pipeline_mode<synchronous>, transform_indices = @transform_6, window_bounds = array<i64: 1, 128>}, {pipeline_mode = #tpu.pipeline_mode<synchronous>, transform_indices = @transform_7, window_bounds = array<i64: 1, 128>}, {pipeline_mode = #tpu.pipeline_mode<synchronous>, transform_indices = @transform_8, window_bounds = array<i64: 1, 128>}, {pipeline_mode = #tpu.pipeline_mode<synchronous>, transform_indices = @transform_9, window_bounds = array<i64: 1, 128>}, {pipeline_mode = #tpu.pipeline_mode<synchronous>, transform_indices = @transform_10, window_bounds = array<i64: 1, 128>}]} {
    %c0 = arith.constant 0 : index
    %c0_0 = arith.constant 0 : index
    %0 = vector.load %arg1[%c0, %c0_0] : memref<8x16xf32, #tpu.memory_space<vmem>>, vector<8x16xf32>
    %c0_1 = arith.constant 0 : index
    %c0_2 = arith.constant 0 : index
    %1 = vector.load %arg2[%c0_1, %c0_2] : memref<16x512xf32, #tpu.memory_space<vmem>>, vector<16x512xf32>
    %cst = arith.constant dense<0.000000e+00> : vector<8x512xf32>
    %2 = tpu.matmul %0, %1, %cst {dimension_numbers = #tpu.dot_dimension_numbers<[1], [0], [0], [1], [0, 0, 1, 1], [], []>} : vector<8x16xf32>, vector<16x512xf32>, vector<8x512xf32> -> vector<8x512xf32>
    %c0_3 = arith.constant 0 : index
    %c0_4 = arith.constant 0 : index
    %3 = vector.load %arg3[%c0_3, %c0_4] : memref<1x512xf32, #tpu.memory_space<vmem>>, vector<1x512xf32>
    %4 = vector.broadcast %3 : vector<1x512xf32> to vector<8x512xf32>
    %5 = arith.addf %2, %4 : vector<8x512xf32>
    %c0_5 = arith.constant 0 : index
    %c0_6 = arith.constant 0 : index
    %6 = vector.load %arg12[%c0_5, %c0_6] : memref<8x512xf32, #tpu.memory_space<vmem>>, vector<8x512xf32>
    tpu.vector_store %arg12[%c0_5, %c0_6], %5 {strides = array<i32>} : memref<8x512xf32, #tpu.memory_space<vmem>>, vector<8x512xf32>,
    %c0_7 = arith.constant 0 : index
    %c0_8 = arith.constant 0 : index
    %7 = vector.load %arg7[%c0_7, %c0_8] : memref<1x128xf32, #tpu.memory_space<vmem>>, vector<1x128xf32>
    %c0_9 = arith.constant 0 : index
    %c0_10 = arith.constant 0 : index
    %8 = vector.load %arg8[%c0_9, %c0_10] : memref<1x128xf32, #tpu.memory_space<vmem>>, vector<1x128xf32>
    %c0_11 = arith.constant 0 : index
    %c0_12 = arith.constant 0 : index
    %9 = vector.load %arg4[%c0_11, %c0_12] : memref<128x512xf32, #tpu.memory_space<vmem>>, vector<128x512xf32>
    %cst_13 = arith.constant dense<0.000000e+00> : vector<1x512xf32>
    %10 = tpu.matmul %7, %9, %cst_13 {dimension_numbers = #tpu.dot_dimension_numbers<[1], [0], [0], [1], [0, 0, 1, 1], [], []>} : vector<1x128xf32>, vector<128x512xf32>, vector<1x512xf32> -> vector<1x512xf32>
    %c0_14 = arith.constant 0 : index
    %c0_15 = arith.constant 0 : index
    %11 = vector.load %arg12[%c0_14, %c0_15] : memref<8x512xf32, #tpu.memory_space<vmem>>, vector<1x512xf32>
    %12 = arith.addf %10, %11 : vector<1x512xf32>
    %13 = vector.extract_strided_slice %12 {offsets = [0, 0], sizes = [1, 128], strides = [1, 1]} : vector<1x512xf32> to vector<1x128xf32>
    %14 = arith.negf %13 : vector<1x128xf32>
    %15 = math.exp %14 : vector<1x128xf32>
    %cst_16 = arith.constant 1.000000e+00 : f32
    %16 = vector.broadcast %cst_16 : f32 to vector<1x128xf32>
    %17 = arith.addf %16, %15 : vector<1x128xf32>
    %18 = arith.divf %16, %17 : vector<1x128xf32>
    %19 = vector.extract_strided_slice %12 {offsets = [0, 128], sizes = [1, 128], strides = [1, 1]} : vector<1x512xf32> to vector<1x128xf32>
    %20 = arith.negf %19 : vector<1x128xf32>
    %21 = math.exp %20 : vector<1x128xf32>
    %cst_17 = arith.constant 1.000000e+00 : f32
    %22 = vector.broadcast %cst_17 : f32 to vector<1x128xf32>
    %23 = arith.addf %22, %21 : vector<1x128xf32>
    %24 = arith.divf %22, %23 : vector<1x128xf32>
    %25 = vector.extract_strided_slice %12 {offsets = [0, 256], sizes = [1, 128], strides = [1, 1]} : vector<1x512xf32> to vector<1x128xf32>
    %26 = math.tanh %25 : vector<1x128xf32>
    %27 = vector.extract_strided_slice %12 {offsets = [0, 384], sizes = [1, 128], strides = [1, 1]} : vector<1x512xf32> to vector<1x128xf32>
    %28 = arith.negf %27 : vector<1x128xf32>
    %29 = math.exp %28 : vector<1x128xf32>
    %cst_18 = arith.constant 1.000000e+00 : f32
    %30 = vector.broadcast %cst_18 : f32 to vector<1x128xf32>
    %31 = arith.addf %30, %29 : vector<1x128xf32>
    %32 = arith.divf %30, %31 : vector<1x128xf32>
    %33 = arith.mulf %24, %8 : vector<1x128xf32>
    %34 = arith.mulf %18, %26 : vector<1x128xf32>
    %35 = arith.addf %33, %34 : vector<1x128xf32>
    %36 = math.tanh %35 : vector<1x128xf32>
    %37 = arith.mulf %32, %36 : vector<1x128xf32>
    %c0_19 = arith.constant 0 : index
    %c0_20 = arith.constant 0 : index
    %38 = vector.load %arg4[%c0_19, %c0_20] : memref<128x512xf32, #tpu.memory_space<vmem>>, vector<128x512xf32>
    %cst_21 = arith.constant dense<0.000000e+00> : vector<1x512xf32>
    %39 = tpu.matmul %37, %38, %cst_21 {dimension_numbers = #tpu.dot_dimension_numbers<[1], [0], [0], [1], [0, 0, 1, 1], [], []>} : vector<1x128xf32>, vector<128x512xf32>, vector<1x512xf32> -> vector<1x512xf32>
    %c1 = arith.constant 1 : index
    %c0_22 = arith.constant 0 : index
    %40 = vector.load %arg12[%c1, %c0_22] : memref<8x512xf32, #tpu.memory_space<vmem>>, vector<1x512xf32>
    %41 = arith.addf %39, %40 : vector<1x512xf32>
    %42 = vector.extract_strided_slice %41 {offsets = [0, 0], sizes = [1, 128], strides = [1, 1]} : vector<1x512xf32> to vector<1x128xf32>
    %43 = arith.negf %42 : vector<1x128xf32>
    %44 = math.exp %43 : vector<1x128xf32>
    %cst_23 = arith.constant 1.000000e+00 : f32
    %45 = vector.broadcast %cst_23 : f32 to vector<1x128xf32>
    %46 = arith.addf %45, %44 : vector<1x128xf32>
    %47 = arith.divf %45, %46 : vector<1x128xf32>
    %48 = vector.extract_strided_slice %41 {offsets = [0, 128], sizes = [1, 128], strides = [1, 1]} : vector<1x512xf32> to vector<1x128xf32>
    %49 = arith.negf %48 : vector<1x128xf32>
    %50 = math.exp %49 : vector<1x128xf32>
    %cst_24 = arith.constant 1.000000e+00 : f32
    %51 = vector.broadcast %cst_24 : f32 to vector<1x128xf32>
    %52 = arith.addf %51, %50 : vector<1x128xf32>
    %53 = arith.divf %51, %52 : vector<1x128xf32>
    %54 = vector.extract_strided_slice %41 {offsets = [0, 256], sizes = [1, 128], strides = [1, 1]} : vector<1x512xf32> to vector<1x128xf32>
    %55 = math.tanh %54 : vector<1x128xf32>
    %56 = vector.extract_strided_slice %41 {offsets = [0, 384], sizes = [1, 128], strides = [1, 1]} : vector<1x512xf32> to vector<1x128xf32>
    %57 = arith.negf %56 : vector<1x128xf32>
    %58 = math.exp %57 : vector<1x128xf32>
    %cst_25 = arith.constant 1.000000e+00 : f32
    %59 = vector.broadcast %cst_25 : f32 to vector<1x128xf32>
    %60 = arith.addf %59, %58 : vector<1x128xf32>
    %61 = arith.divf %59, %60 : vector<1x128xf32>
    %62 = arith.mulf %53, %35 : vector<1x128xf32>
    %63 = arith.mulf %47, %55 : vector<1x128xf32>
    %64 = arith.addf %62, %63 : vector<1x128xf32>
    %65 = math.tanh %64 : vector<1x128xf32>
    %66 = arith.mulf %61, %65 : vector<1x128xf32>
    %c0_26 = arith.constant 0 : index
    %c0_27 = arith.constant 0 : index
    %67 = vector.load %arg4[%c0_26, %c0_27] : memref<128x512xf32, #tpu.memory_space<vmem>>, vector<128x512xf32>
    %cst_28 = arith.constant dense<0.000000e+00> : vector<1x512xf32>
    %68 = tpu.matmul %66, %67, %cst_28 {dimension_numbers = #tpu.dot_dimension_numbers<[1], [0], [0], [1], [0, 0, 1, 1], [], []>} : vector<1x128xf32>, vector<128x512xf32>, vector<1x512xf32> -> vector<1x512xf32>
    %c2 = arith.constant 2 : index
    %c0_29 = arith.constant 0 : index
    %69 = vector.load %arg12[%c2, %c0_29] : memref<8x512xf32, #tpu.memory_space<vmem>>, vector<1x512xf32>
    %70 = arith.addf %68, %69 : vector<1x512xf32>
    %71 = vector.extract_strided_slice %70 {offsets = [0, 0], sizes = [1, 128], strides = [1, 1]} : vector<1x512xf32> to vector<1x128xf32>
    %72 = arith.negf %71 : vector<1x128xf32>
    %73 = math.exp %72 : vector<1x128xf32>
    %cst_30 = arith.constant 1.000000e+00 : f32
    %74 = vector.broadcast %cst_30 : f32 to vector<1x128xf32>
    %75 = arith.addf %74, %73 : vector<1x128xf32>
    %76 = arith.divf %74, %75 : vector<1x128xf32>
    %77 = vector.extract_strided_slice %70 {offsets = [0, 128], sizes = [1, 128], strides = [1, 1]} : vector<1x512xf32> to vector<1x128xf32>
    %78 = arith.negf %77 : vector<1x128xf32>
    %79 = math.exp %78 : vector<1x128xf32>
    %cst_31 = arith.constant 1.000000e+00 : f32
    %80 = vector.broadcast %cst_31 : f32 to vector<1x128xf32>
    %81 = arith.addf %80, %79 : vector<1x128xf32>
    %82 = arith.divf %80, %81 : vector<1x128xf32>
    %83 = vector.extract_strided_slice %70 {offsets = [0, 256], sizes = [1, 128], strides = [1, 1]} : vector<1x512xf32> to vector<1x128xf32>
    %84 = math.tanh %83 : vector<1x128xf32>
    %85 = vector.extract_strided_slice %70 {offsets = [0, 384], sizes = [1, 128], strides = [1, 1]} : vector<1x512xf32> to vector<1x128xf32>
    %86 = arith.negf %85 : vector<1x128xf32>
    %87 = math.exp %86 : vector<1x128xf32>
    %cst_32 = arith.constant 1.000000e+00 : f32
    %88 = vector.broadcast %cst_32 : f32 to vector<1x128xf32>
    %89 = arith.addf %88, %87 : vector<1x128xf32>
    %90 = arith.divf %88, %89 : vector<1x128xf32>
    %91 = arith.mulf %82, %64 : vector<1x128xf32>
    %92 = arith.mulf %76, %84 : vector<1x128xf32>
    %93 = arith.addf %91, %92 : vector<1x128xf32>
    %94 = math.tanh %93 : vector<1x128xf32>
    %95 = arith.mulf %90, %94 : vector<1x128xf32>
    %c0_33 = arith.constant 0 : index
    %c0_34 = arith.constant 0 : index
    %96 = vector.load %arg4[%c0_33, %c0_34] : memref<128x512xf32, #tpu.memory_space<vmem>>, vector<128x512xf32>
    %cst_35 = arith.constant dense<0.000000e+00> : vector<1x512xf32>
    %97 = tpu.matmul %95, %96, %cst_35 {dimension_numbers = #tpu.dot_dimension_numbers<[1], [0], [0], [1], [0, 0, 1, 1], [], []>} : vector<1x128xf32>, vector<128x512xf32>, vector<1x512xf32> -> vector<1x512xf32>
    %c3 = arith.constant 3 : index
    %c0_36 = arith.constant 0 : index
    %98 = vector.load %arg12[%c3, %c0_36] : memref<8x512xf32, #tpu.memory_space<vmem>>, vector<1x512xf32>
    %99 = arith.addf %97, %98 : vector<1x512xf32>
    %100 = vector.extract_strided_slice %99 {offsets = [0, 0], sizes = [1, 128], strides = [1, 1]} : vector<1x512xf32> to vector<1x128xf32>
    %101 = arith.negf %100 : vector<1x128xf32>
    %102 = math.exp %101 : vector<1x128xf32>
    %cst_37 = arith.constant 1.000000e+00 : f32
    %103 = vector.broadcast %cst_37 : f32 to vector<1x128xf32>
    %104 = arith.addf %103, %102 : vector<1x128xf32>
    %105 = arith.divf %103, %104 : vector<1x128xf32>
    %106 = vector.extract_strided_slice %99 {offsets = [0, 128], sizes = [1, 128], strides = [1, 1]} : vector<1x512xf32> to vector<1x128xf32>
    %107 = arith.negf %106 : vector<1x128xf32>
    %108 = math.exp %107 : vector<1x128xf32>
    %cst_38 = arith.constant 1.000000e+00 : f32
    %109 = vector.broadcast %cst_38 : f32 to vector<1x128xf32>
    %110 = arith.addf %109, %108 : vector<1x128xf32>
    %111 = arith.divf %109, %110 : vector<1x128xf32>
    %112 = vector.extract_strided_slice %99 {offsets = [0, 256], sizes = [1, 128], strides = [1, 1]} : vector<1x512xf32> to vector<1x128xf32>
    %113 = math.tanh %112 : vector<1x128xf32>
    %114 = vector.extract_strided_slice %99 {offsets = [0, 384], sizes = [1, 128], strides = [1, 1]} : vector<1x512xf32> to vector<1x128xf32>
    %115 = arith.negf %114 : vector<1x128xf32>
    %116 = math.exp %115 : vector<1x128xf32>
    %cst_39 = arith.constant 1.000000e+00 : f32
    %117 = vector.broadcast %cst_39 : f32 to vector<1x128xf32>
    %118 = arith.addf %117, %116 : vector<1x128xf32>
    %119 = arith.divf %117, %118 : vector<1x128xf32>
    %120 = arith.mulf %111, %93 : vector<1x128xf32>
    %121 = arith.mulf %105, %113 : vector<1x128xf32>
    %122 = arith.addf %120, %121 : vector<1x128xf32>
    %123 = math.tanh %122 : vector<1x128xf32>
    %124 = arith.mulf %119, %123 : vector<1x128xf32>
    %c0_40 = arith.constant 0 : index
    %c0_41 = arith.constant 0 : index
    %125 = vector.load %arg4[%c0_40, %c0_41] : memref<128x512xf32, #tpu.memory_space<vmem>>, vector<128x512xf32>
    %cst_42 = arith.constant dense<0.000000e+00> : vector<1x512xf32>
    %126 = tpu.matmul %124, %125, %cst_42 {dimension_numbers = #tpu.dot_dimension_numbers<[1], [0], [0], [1], [0, 0, 1, 1], [], []>} : vector<1x128xf32>, vector<128x512xf32>, vector<1x512xf32> -> vector<1x512xf32>
    %c4 = arith.constant 4 : index
    %c0_43 = arith.constant 0 : index
    %127 = vector.load %arg12[%c4, %c0_43] : memref<8x512xf32, #tpu.memory_space<vmem>>, vector<1x512xf32>
    %128 = arith.addf %126, %127 : vector<1x512xf32>
    %129 = vector.extract_strided_slice %128 {offsets = [0, 0], sizes = [1, 128], strides = [1, 1]} : vector<1x512xf32> to vector<1x128xf32>
    %130 = arith.negf %129 : vector<1x128xf32>
    %131 = math.exp %130 : vector<1x128xf32>
    %cst_44 = arith.constant 1.000000e+00 : f32
    %132 = vector.broadcast %cst_44 : f32 to vector<1x128xf32>
    %133 = arith.addf %132, %131 : vector<1x128xf32>
    %134 = arith.divf %132, %133 : vector<1x128xf32>
    %135 = vector.extract_strided_slice %128 {offsets = [0, 128], sizes = [1, 128], strides = [1, 1]} : vector<1x512xf32> to vector<1x128xf32>
    %136 = arith.negf %135 : vector<1x128xf32>
    %137 = math.exp %136 : vector<1x128xf32>
    %cst_45 = arith.constant 1.000000e+00 : f32
    %138 = vector.broadcast %cst_45 : f32 to vector<1x128xf32>
    %139 = arith.addf %138, %137 : vector<1x128xf32>
    %140 = arith.divf %138, %139 : vector<1x128xf32>
    %141 = vector.extract_strided_slice %128 {offsets = [0, 256], sizes = [1, 128], strides = [1, 1]} : vector<1x512xf32> to vector<1x128xf32>
    %142 = math.tanh %141 : vector<1x128xf32>
    %143 = vector.extract_strided_slice %128 {offsets = [0, 384], sizes = [1, 128], strides = [1, 1]} : vector<1x512xf32> to vector<1x128xf32>
    %144 = arith.negf %143 : vector<1x128xf32>
    %145 = math.exp %144 : vector<1x128xf32>
    %cst_46 = arith.constant 1.000000e+00 : f32
    %146 = vector.broadcast %cst_46 : f32 to vector<1x128xf32>
    %147 = arith.addf %146, %145 : vector<1x128xf32>
    %148 = arith.divf %146, %147 : vector<1x128xf32>
    %149 = arith.mulf %140, %122 : vector<1x128xf32>
    %150 = arith.mulf %134, %142 : vector<1x128xf32>
    %151 = arith.addf %149, %150 : vector<1x128xf32>
    %152 = math.tanh %151 : vector<1x128xf32>
    %153 = arith.mulf %148, %152 : vector<1x128xf32>
    %c0_47 = arith.constant 0 : index
    %c0_48 = arith.constant 0 : index
    %154 = vector.load %arg4[%c0_47, %c0_48] : memref<128x512xf32, #tpu.memory_space<vmem>>, vector<128x512xf32>
    %cst_49 = arith.constant dense<0.000000e+00> : vector<1x512xf32>
    %155 = tpu.matmul %153, %154, %cst_49 {dimension_numbers = #tpu.dot_dimension_numbers<[1], [0], [0], [1], [0, 0, 1, 1], [], []>} : vector<1x128xf32>, vector<128x512xf32>, vector<1x512xf32> -> vector<1x512xf32>
    %c5 = arith.constant 5 : index
    %c0_50 = arith.constant 0 : index
    %156 = vector.load %arg12[%c5, %c0_50] : memref<8x512xf32, #tpu.memory_space<vmem>>, vector<1x512xf32>
    %157 = arith.addf %155, %156 : vector<1x512xf32>
    %158 = vector.extract_strided_slice %157 {offsets = [0, 0], sizes = [1, 128], strides = [1, 1]} : vector<1x512xf32> to vector<1x128xf32>
    %159 = arith.negf %158 : vector<1x128xf32>
    %160 = math.exp %159 : vector<1x128xf32>
    %cst_51 = arith.constant 1.000000e+00 : f32
    %161 = vector.broadcast %cst_51 : f32 to vector<1x128xf32>
    %162 = arith.addf %161, %160 : vector<1x128xf32>
    %163 = arith.divf %161, %162 : vector<1x128xf32>
    %164 = vector.extract_strided_slice %157 {offsets = [0, 128], sizes = [1, 128], strides = [1, 1]} : vector<1x512xf32> to vector<1x128xf32>
    %165 = arith.negf %164 : vector<1x128xf32>
    %166 = math.exp %165 : vector<1x128xf32>
    %cst_52 = arith.constant 1.000000e+00 : f32
    %167 = vector.broadcast %cst_52 : f32 to vector<1x128xf32>
    %168 = arith.addf %167, %166 : vector<1x128xf32>
    %169 = arith.divf %167, %168 : vector<1x128xf32>
    %170 = vector.extract_strided_slice %157 {offsets = [0, 256], sizes = [1, 128], strides = [1, 1]} : vector<1x512xf32> to vector<1x128xf32>
    %171 = math.tanh %170 : vector<1x128xf32>
    %172 = vector.extract_strided_slice %157 {offsets = [0, 384], sizes = [1, 128], strides = [1, 1]} : vector<1x512xf32> to vector<1x128xf32>
    %173 = arith.negf %172 : vector<1x128xf32>
    %174 = math.exp %173 : vector<1x128xf32>
    %cst_53 = arith.constant 1.000000e+00 : f32
    %175 = vector.broadcast %cst_53 : f32 to vector<1x128xf32>
    %176 = arith.addf %175, %174 : vector<1x128xf32>
    %177 = arith.divf %175, %176 : vector<1x128xf32>
    %178 = arith.mulf %169, %151 : vector<1x128xf32>
    %179 = arith.mulf %163, %171 : vector<1x128xf32>
    %180 = arith.addf %178, %179 : vector<1x128xf32>
    %181 = math.tanh %180 : vector<1x128xf32>
    %182 = arith.mulf %177, %181 : vector<1x128xf32>
    %c0_54 = arith.constant 0 : index
    %c0_55 = arith.constant 0 : index
    %183 = vector.load %arg4[%c0_54, %c0_55] : memref<128x512xf32, #tpu.memory_space<vmem>>, vector<128x512xf32>
    %cst_56 = arith.constant dense<0.000000e+00> : vector<1x512xf32>
    %184 = tpu.matmul %182, %183, %cst_56 {dimension_numbers = #tpu.dot_dimension_numbers<[1], [0], [0], [1], [0, 0, 1, 1], [], []>} : vector<1x128xf32>, vector<128x512xf32>, vector<1x512xf32> -> vector<1x512xf32>
    %c6 = arith.constant 6 : index
    %c0_57 = arith.constant 0 : index
    %185 = vector.load %arg12[%c6, %c0_57] : memref<8x512xf32, #tpu.memory_space<vmem>>, vector<1x512xf32>
    %186 = arith.addf %184, %185 : vector<1x512xf32>
    %187 = vector.extract_strided_slice %186 {offsets = [0, 0], sizes = [1, 128], strides = [1, 1]} : vector<1x512xf32> to vector<1x128xf32>
    %188 = arith.negf %187 : vector<1x128xf32>
    %189 = math.exp %188 : vector<1x128xf32>
    %cst_58 = arith.constant 1.000000e+00 : f32
    %190 = vector.broadcast %cst_58 : f32 to vector<1x128xf32>
    %191 = arith.addf %190, %189 : vector<1x128xf32>
    %192 = arith.divf %190, %191 : vector<1x128xf32>
    %193 = vector.extract_strided_slice %186 {offsets = [0, 128], sizes = [1, 128], strides = [1, 1]} : vector<1x512xf32> to vector<1x128xf32>
    %194 = arith.negf %193 : vector<1x128xf32>
    %195 = math.exp %194 : vector<1x128xf32>
    %cst_59 = arith.constant 1.000000e+00 : f32
    %196 = vector.broadcast %cst_59 : f32 to vector<1x128xf32>
    %197 = arith.addf %196, %195 : vector<1x128xf32>
    %198 = arith.divf %196, %197 : vector<1x128xf32>
    %199 = vector.extract_strided_slice %186 {offsets = [0, 256], sizes = [1, 128], strides = [1, 1]} : vector<1x512xf32> to vector<1x128xf32>
    %200 = math.tanh %199 : vector<1x128xf32>
    %201 = vector.extract_strided_slice %186 {offsets = [0, 384], sizes = [1, 128], strides = [1, 1]} : vector<1x512xf32> to vector<1x128xf32>
    %202 = arith.negf %201 : vector<1x128xf32>
    %203 = math.exp %202 : vector<1x128xf32>
    %cst_60 = arith.constant 1.000000e+00 : f32
    %204 = vector.broadcast %cst_60 : f32 to vector<1x128xf32>
    %205 = arith.addf %204, %203 : vector<1x128xf32>
    %206 = arith.divf %204, %205 : vector<1x128xf32>
    %207 = arith.mulf %198, %180 : vector<1x128xf32>
    %208 = arith.mulf %192, %200 : vector<1x128xf32>
    %209 = arith.addf %207, %208 : vector<1x128xf32>
    %210 = math.tanh %209 : vector<1x128xf32>
    %211 = arith.mulf %206, %210 : vector<1x128xf32>
    %c0_61 = arith.constant 0 : index
    %c0_62 = arith.constant 0 : index
    %212 = vector.load %arg4[%c0_61, %c0_62] : memref<128x512xf32, #tpu.memory_space<vmem>>, vector<128x512xf32>
    %cst_63 = arith.constant dense<0.000000e+00> : vector<1x512xf32>
    %213 = tpu.matmul %211, %212, %cst_63 {dimension_numbers = #tpu.dot_dimension_numbers<[1], [0], [0], [1], [0, 0, 1, 1], [], []>} : vector<1x128xf32>, vector<128x512xf32>, vector<1x512xf32> -> vector<1x512xf32>
    %c7 = arith.constant 7 : index
    %c0_64 = arith.constant 0 : index
    %214 = vector.load %arg12[%c7, %c0_64] : memref<8x512xf32, #tpu.memory_space<vmem>>, vector<1x512xf32>
    %215 = arith.addf %213, %214 : vector<1x512xf32>
    %216 = vector.extract_strided_slice %215 {offsets = [0, 0], sizes = [1, 128], strides = [1, 1]} : vector<1x512xf32> to vector<1x128xf32>
    %217 = arith.negf %216 : vector<1x128xf32>
    %218 = math.exp %217 : vector<1x128xf32>
    %cst_65 = arith.constant 1.000000e+00 : f32
    %219 = vector.broadcast %cst_65 : f32 to vector<1x128xf32>
    %220 = arith.addf %219, %218 : vector<1x128xf32>
    %221 = arith.divf %219, %220 : vector<1x128xf32>
    %222 = vector.extract_strided_slice %215 {offsets = [0, 128], sizes = [1, 128], strides = [1, 1]} : vector<1x512xf32> to vector<1x128xf32>
    %223 = arith.negf %222 : vector<1x128xf32>
    %224 = math.exp %223 : vector<1x128xf32>
    %cst_66 = arith.constant 1.000000e+00 : f32
    %225 = vector.broadcast %cst_66 : f32 to vector<1x128xf32>
    %226 = arith.addf %225, %224 : vector<1x128xf32>
    %227 = arith.divf %225, %226 : vector<1x128xf32>
    %228 = vector.extract_strided_slice %215 {offsets = [0, 256], sizes = [1, 128], strides = [1, 1]} : vector<1x512xf32> to vector<1x128xf32>
    %229 = math.tanh %228 : vector<1x128xf32>
    %230 = vector.extract_strided_slice %215 {offsets = [0, 384], sizes = [1, 128], strides = [1, 1]} : vector<1x512xf32> to vector<1x128xf32>
    %231 = arith.negf %230 : vector<1x128xf32>
    %232 = math.exp %231 : vector<1x128xf32>
    %cst_67 = arith.constant 1.000000e+00 : f32
    %233 = vector.broadcast %cst_67 : f32 to vector<1x128xf32>
    %234 = arith.addf %233, %232 : vector<1x128xf32>
    %235 = arith.divf %233, %234 : vector<1x128xf32>
    %236 = arith.mulf %227, %209 : vector<1x128xf32>
    %237 = arith.mulf %221, %229 : vector<1x128xf32>
    %238 = arith.addf %236, %237 : vector<1x128xf32>
    %239 = math.tanh %238 : vector<1x128xf32>
    %240 = arith.mulf %235, %239 : vector<1x128xf32>
    %c0_68 = arith.constant 0 : index
    %c0_69 = arith.constant 0 : index
    %241 = vector.load %arg5[%c0_68, %c0_69] : memref<128x128xf32, #tpu.memory_space<vmem>>, vector<128x128xf32>
    %cst_70 = arith.constant dense<0.000000e+00> : vector<1x128xf32>
    %242 = tpu.matmul %240, %241, %cst_70 {dimension_numbers = #tpu.dot_dimension_numbers<[1], [0], [0], [1], [0, 0, 1, 1], [], []>} : vector<1x128xf32>, vector<128x128xf32>, vector<1x128xf32> -> vector<1x128xf32>
    %c0_71 = arith.constant 0 : index
    %c0_72 = arith.constant 0 : index
    %243 = vector.load %arg6[%c0_71, %c0_72] : memref<1x128xf32, #tpu.memory_space<vmem>>, vector<1x128xf32>
    %244 = arith.addf %242, %243 : vector<1x128xf32>
    %cst_73 = arith.constant 0.000000e+00 : f32
    %245 = vector.broadcast %cst_73 : f32 to vector<1x128xf32>
    %246 = arith.maximumf %244, %245 : vector<1x128xf32>
    %c0_74 = arith.constant 0 : index
    %c0_75 = arith.constant 0 : index
    %247 = vector.load %arg9[%c0_74, %c0_75] : memref<1x128xf32, #tpu.memory_space<vmem>>, vector<1x128xf32>
    tpu.vector_store %arg9[%c0_74, %c0_75], %246 {strides = array<i32>} : memref<1x128xf32, #tpu.memory_space<vmem>>, vector<1x128xf32>,
    %c0_76 = arith.constant 0 : index
    %c0_77 = arith.constant 0 : index
    %248 = vector.load %arg10[%c0_76, %c0_77] : memref<1x128xf32, #tpu.memory_space<vmem>>, vector<1x128xf32>
    tpu.vector_store %arg10[%c0_76, %c0_77], %240 {strides = array<i32>} : memref<1x128xf32, #tpu.memory_space<vmem>>, vector<1x128xf32>,
    %c0_78 = arith.constant 0 : index
    %c0_79 = arith.constant 0 : index
    %249 = vector.load %arg11[%c0_78, %c0_79] : memref<1x128xf32, #tpu.memory_space<vmem>>, vector<1x128xf32>
    tpu.vector_store %arg11[%c0_78, %c0_79], %238 {strides = array<i32>} : memref<1x128xf32, #tpu.memory_space<vmem>>, vector<1x128xf32>,
    return
  }
  func.func @transform_0(%arg0: i32) -> (i32, i32) {
    %c0_i32 = arith.constant 0 : i32
    %c0_i32_0 = arith.constant 0 : i32
    %c0_i32_1 = arith.constant 0 : i32
    return %c0_i32, %c0_i32_0 : i32, i32
  }
  func.func @transform_1(%arg0: i32) -> (i32, i32) {
    %c0_i32 = arith.constant 0 : i32
    %c0_i32_0 = arith.constant 0 : i32
    %c0_i32_1 = arith.constant 0 : i32
    return %c0_i32, %c0_i32_0 : i32, i32
  }
  func.func @transform_2(%arg0: i32) -> (i32, i32) {
    %c0_i32 = arith.constant 0 : i32
    %c0_i32_0 = arith.constant 0 : i32
    %c0_i32_1 = arith.constant 0 : i32
    return %c0_i32, %c0_i32_0 : i32, i32
  }
  func.func @transform_3(%arg0: i32) -> (i32, i32) {
    %c0_i32 = arith.constant 0 : i32
    %c0_i32_0 = arith.constant 0 : i32
    %c0_i32_1 = arith.constant 0 : i32
    return %c0_i32, %c0_i32_0 : i32, i32
  }
  func.func @transform_4(%arg0: i32) -> (i32, i32) {
    %c0_i32 = arith.constant 0 : i32
    %c0_i32_0 = arith.constant 0 : i32
    %c0_i32_1 = arith.constant 0 : i32
    return %c0_i32, %c0_i32_0 : i32, i32
  }
  func.func @transform_5(%arg0: i32) -> (i32, i32) {
    %c0_i32 = arith.constant 0 : i32
    %c0_i32_0 = arith.constant 0 : i32
    %c0_i32_1 = arith.constant 0 : i32
    return %c0_i32, %c0_i32_0 : i32, i32
  }
  func.func @transform_6(%arg0: i32) -> (i32, i32) {
    %c0_i32 = arith.constant 0 : i32
    %c0_i32_0 = arith.constant 0 : i32
    %c0_i32_1 = arith.constant 0 : i32
    return %c0_i32, %c0_i32_0 : i32, i32
  }
  func.func @transform_7(%arg0: i32) -> (i32, i32) {
    %c0_i32 = arith.constant 0 : i32
    %c0_i32_0 = arith.constant 0 : i32
    %c0_i32_1 = arith.constant 0 : i32
    return %c0_i32, %c0_i32_0 : i32, i32
  }
  func.func @transform_8(%arg0: i32) -> (i32, i32) {
    %c0_i32 = arith.constant 0 : i32
    %c0_i32_0 = arith.constant 0 : i32
    %c0_i32_1 = arith.constant 0 : i32
    return %c0_i32, %c0_i32_0 : i32, i32
  }
  func.func @transform_9(%arg0: i32) -> (i32, i32) {
    %c0_i32 = arith.constant 0 : i32
    %c0_i32_0 = arith.constant 0 : i32
    %c0_i32_1 = arith.constant 0 : i32
    return %c0_i32, %c0_i32_0 : i32, i32
  }
  func.func @transform_10(%arg0: i32) -> (i32, i32) {
    %c0_i32 = arith.constant 0 : i32
    %c0_i32_0 = arith.constant 0 : i32
    %c0_i32_1 = arith.constant 0 : i32
    return %c0_i32, %c0_i32_0 : i32, i32
  }
}

</mosaic_0001>

<bundles_post_ra>
// kernel: tpu_custom_call.1
= control target key start
LH: loop header
LB: loop body
LE: loop exit
PB: predicated region body
PF: predicated region fallthrough
CT: control target
= control target key end

     0   :  { %16 = vsyncpa [#allocation4], 0  ;;  %s2943_s0 = inlined_call_operand.hbm [shape: f32[8,16], index: 0, kind: input, shape index: {}]   ;;  %s2944_s1 = inlined_call_operand.hbm [shape: f32[16,512], index: 1, kind: input, shape index: {}]   ;;  %s2945_s2 = inlined_call_operand.hbm [shape: f32[1,512], index: 2, kind: input, shape index: {}]   ;;  %s2946_s3 = inlined_call_operand.hbm [shape: f32[128,512], index: 3, kind: input, shape index: {}]   ;;  %s2947_s4 = inlined_call_operand.hbm [shape: f32[128,128], index: 4, kind: input, shape index: {}]   ;;  %s2948_s5 = inlined_call_operand.vmem [shape: f32[1,128], index: 5, kind: input, shape index: {}]   ;;  %s2949_s6 = inlined_call_operand.vmem [shape: f32[1,128], index: 6, kind: input, shape index: {}]   ;;  %s2950_s7 = inlined_call_operand.vmem [shape: f32[1,128], index: 7, kind: input, shape index: {}]   ;;  %s2951_s8 = inlined_call_operand.hbm [shape: f32[1,128], index: 8, kind: output, shape index: {0}]   ;;  %s2952_s9 = inlined_call_operand.hbm [shape: f32[1,128], index: 9, kind: output, shape index: {1}]   ;;  %s2953_s10 = inlined_call_operand.hbm [shape: f32[1,128], index: 10, kind: output, shape index: {2}]  }
   0x1   :  { %17 = vsyncpa [#allocation7], 0 }
   0x2   :  { %18 = vsyncpa [#allocation10], 0 }
   0x3   :  { %19 = vsyncpa [#allocation5], 0  ;;  %s36_s15 = sshll.u32 %s2944_s1, 4  ;;  %s37_s15 = int_to_ptr.hbm [resolvable:$true] %s36_s15 }
   0x4   :  { %20 = vsyncpa [#allocation14], 0  ;;  %s2037_s16 = smov [#allocation6]   ;;  %s60_s20 = sshll.u32 %s2946_s3, 4  ;;  %s61_s20 = int_to_ptr.hbm [resolvable:$true] %s60_s20 }
   0x5   :  { %s38_s17 = sshll.u32 %s2037_s16, 4  ;;  %s2038_s21 = smov 512   ;;  %s39_s17 = int_to_ptr.vmem [resolvable:$true] %s38_s17 }
   0x6   :  { %s2039_s22 = smov 32   ;;  %s2040_s23 = smov [#allocation9]  }
   0x7   :  { %44 = dma.hbm_to_vmem [thread:$0]  %s37_s15, 1024, %s39_s17, [#allocation7], %s2038_s21, %s2038_s21, %s2039_s22  }
   0x8   :  { %s62_s24 = sshll.u32 %s2040_s23, 4  ;;  %s26_s27 = sshll.u32 %s2943_s0, 4  ;;  %s63_s24 = int_to_ptr.vmem [resolvable:$true] %s62_s24  ;;  %s27_s27 = int_to_ptr.hbm [resolvable:$true] %s26_s27 }
   0x9   :  { %68 = dma.hbm_to_vmem [thread:$0]  %s61_s20, 8192, %s63_s24, [#allocation10], %s2038_s21, %s2038_s21, %s2039_s22  }
   0xa   :  { %s50_s29 = sshll.u32 %s2945_s2, 4  ;;  %s2041_s30 = smov [#allocation3]   ;;  %s51_s29 = int_to_ptr.hbm [resolvable:$true] %s50_s29 }
   0xb   :  { %s28_s11 = sshll.u32 %s2041_s30, 4  ;;  %s2042_s3 = smov [#allocation8]   ;;  %s29_s11 = int_to_ptr.vmem [resolvable:$true] %s28_s11 }
   0xc   :  { %31 = dma.hbm_to_vmem [thread:$0]  %s27_s27, 128, %s29_s11, [#allocation4]  }
   0xd   :  { %s52_s12 = sshll.u32 %s2042_s3, 4  ;;  %s73_s15 = sshll.u32 %s2947_s4, 4  ;;  %s53_s12 = int_to_ptr.vmem [resolvable:$true] %s52_s12  ;;  %s74_s15 = int_to_ptr.hbm [resolvable:$true] %s73_s15 }
   0xe   :  { %55 = dma.hbm_to_vmem [thread:$0]  %s51_s29, 64, %s53_s12, [#allocation7]  }
   0xf   :  { %s2043_s0 = smov [#allocation11]   ;;  %s2044_s17 = smov 128  }
  0x10   :  { %s75_s16 = sshll.u32 %s2043_s0, 4  ;;  %s2045_s18 = smov 8   ;;  %s76_s16 = int_to_ptr.vmem [resolvable:$true] %s75_s16 }
  0x11   :  { %81 = dma.hbm_to_vmem [thread:$0]  %s74_s15, 2048, %s76_s16, [#allocation10], %s2044_s17, %s2044_s17, %s2045_s18  }
  0x12   :  { %2027 = dma.done.wait [#allocation4], 128  }
  0x13   :  { %2028 = vsyncadd [#allocation4], 4294967168 }
  0x14   :  { %2029 = dma.done.wait [#allocation7], 1088  }
  0x15   :  { %2030 = vsyncadd [#allocation7], 4294966208 }
  0x16   :  { %2031 = dma.done.wait [#allocation10], 10240  }
  0x17   :  { %2032 = vsyncadd [#allocation10], 4294957056  ;;  %v113_v0 = vld [vmem:[#allocation6 + $0x20] sm:$0xff]  ;;  %v115_v1 = vld [vmem:[#allocation6 + $0x30] sm:$0xff]  ;;  %vm127_vm0 = vcmask 130048   ;;  %s1571_s21 = sshll.u32 %s2952_s9, 4  ;;  %s1572_s21 = int_to_ptr.hbm [resolvable:$true] %s1571_s21 }
  0x18   :  { %v116_v2 = vld [vmem:[#allocation6 + $0x38] sm:$0xff]  ;;  %145 = vmatpush.msra.mxu1 %v113_v0  ;;  %185 = vmatpush.msra.mxu2 %v115_v1  ;;  %v2119_v3 = vld [vmem:[#allocation9 + $0x1e0] sm:$0xff]  ;;  %v111_v5 = vld [vmem:[#allocation6 + $0x10] sm:$0xff]  ;;  %s2046_s22 = smov [#allocation13]   ;;  %s1582_s26 = sshll.u32 %s2953_s10, 4  ;;  %s1583_s26 = int_to_ptr.hbm [resolvable:$true] %s1582_s26 }
  0x19   :  { %v109_v4 = vld [vmem:[#allocation6] sm:$0xff]  ;;  %205 = vmatpush.msra.mxu3 %v116_v2  ;;  %291 = vmatpush.msra.mxu0 %v2119_v3  ;;  %v112_v6 = vld [vmem:[#allocation6 + $0x18] sm:$0xff]  ;;  %v114_v9 = vld [vmem:[#allocation6 + $0x28] sm:$0xff]  ;;  %s1569_s23 = sshll.u32 %s2046_s22, 4  ;;  %s2047_s27 = smov [#allocation15]   ;;  %s1570_s23 = int_to_ptr.vmem [resolvable:$true] %s1569_s23 }
  0x1a   :  { %v2122_v7 = vld [vmem:[#allocation9 + $0x1c0] sm:$0xff]  ;;  %v108_v8 = vld [vmem:[#allocation3] sm:$0xff]  ;;  %146 = vmatpush.msra.mxu1 %v109_v4  ;;  %186 = vmatpush.msra.mxu2 %v111_v5  ;;  %v2142_v17 = vld [vmem:[#allocation9 + $0x1e8] sm:$0xff]  ;;  %s1580_s1 = sshll.u32 %s2047_s27, 4  ;;  %s2048_s9 = smov [#allocation12]   ;;  %s1581_s1 = int_to_ptr.vmem [resolvable:$true] %s1580_s1 }
  0x1b   :  { %v2124_v10 = vld [vmem:[#allocation9 + $0x1f0] sm:$0xff]  ;;  %v2126_v11 = vld [vmem:[#allocation9 + $0x1f8] sm:$0xff]  ;;  %206 = vmatpush.msra.mxu3 %v112_v6  ;;  %292 = vmatpush.msra.mxu0 %v2122_v7  ;;  %v2129_v12 = vld [vmem:[#allocation9 + $0x1a0] sm:$0xff]  ;;  %s1558_s30 = sshll.u32 %s2048_s9, 4  ;;  %s1560_s12 = sshll.u32 %s2951_s8, 4  ;;  %s1559_s30 = int_to_ptr.vmem [resolvable:$true] %s1558_s30  ;;  %s1561_s12 = int_to_ptr.hbm [resolvable:$true] %s1560_s12 }
  0x1c   :  { %1603 = vmatmul.msk.f32.vlgmr.msra.gmra.mxu1 %vm127_vm0, %v108_v8  ;;  %331 = vmatpush.msrb.mxu2 %v2124_v10  ;;  %v110_v13 = vld [vmem:[#allocation6 + $0x8] sm:$0xff]  ;;  %v2134_v14 = vld [vmem:[#allocation9 + $0x1d0] sm:$0xff]  ;;  %v2136_v15 = vld [vmem:[#allocation9 + $0x1d8] sm:$0xff] }
  0x1d   :  { %165 = vmatpush.msrb.mxu1 %v114_v9  ;;  %351 = vmatpush.msrb.mxu3 %v2126_v11  ;;  %v2140_v16 = vld [vmem:[#allocation9 + $0x180] sm:$0xff]  ;;  %v2145_v18 = vld [vmem:[#allocation9 + $0x1b0] sm:$0xff]  ;;  %v2147_v19 = vld [vmem:[#allocation9 + $0x1b8] sm:$0xff] }
  0x1e   :  { %293 = vmatpush.msra.mxu0 %v2129_v12  ;;  %1605 = vmatmul.msk.f32.vlgmr.msra.gmra.mxu2 %vm127_vm0, %v108_v8  ;;  %v2151_v20 = vld [vmem:[#allocation9 + $0x160] sm:$0xff]  ;;  %v2153_v21 = vld [vmem:[#allocation9 + $0x1c8] sm:$0xff]  ;;  %v2157_v22 = vld [vmem:[#allocation9 + $0x190] sm:$0xff] }
  0x1f   :  { %166 = vmatpush.msrb.mxu1 %v110_v13  ;;  %1606 = vmatmul.msk.f32.vlgmr.msra.gmra.mxu3 %vm127_vm0, %v108_v8  ;;  %v2159_v23 = vld [vmem:[#allocation9 + $0x198] sm:$0xff]  ;;  %v2163_v24 = vld [vmem:[#allocation9 + $0x140] sm:$0xff]  ;;  %v2165_v25 = vld [vmem:[#allocation9 + $0x1a8] sm:$0xff] }
  0x20   :  { %332 = vmatpush.msrb.mxu2 %v2134_v14  ;;  %352 = vmatpush.msrb.mxu3 %v2136_v15  ;;  %v2169_v26 = vld [vmem:[#allocation9 + $0x170] sm:$0xff]  ;;  %v2173_v27 = vld [vmem:[#allocation9 + $0x178] sm:$0xff]  ;;  %v2175_v28 = vld [vmem:[#allocation9 + $0x120] sm:$0xff] }
  0x21   :  { %294 = vmatpush.msra.mxu0 %v2140_v16  ;;  %311 = vmatpush.msra.mxu1 %v2142_v17  ;;  %v2179_v29 = vld [vmem:[#allocation9 + $0x188] sm:$0xff]  ;;  %v2181_v30 = vld [vmem:[#allocation9 + $0x150] sm:$0xff]  ;;  %v2185_v31 = vld [vmem:[#allocation9 + $0x158] sm:$0xff] }
  0x22   :  { %333 = vmatpush.msrb.mxu2 %v2145_v18  ;;  %353 = vmatpush.msrb.mxu3 %v2147_v19  ;;  %v2187_v32 = vld [vmem:[#allocation9 + $0x100] sm:$0xff]  ;;  %v2191_v33 = vld [vmem:[#allocation9 + $0x168] sm:$0xff]  ;;  %v2193_v34 = vld [vmem:[#allocation9 + $0x130] sm:$0xff] }
  0x23   :  { %295 = vmatpush.msra.mxu0 %v2151_v20  ;;  %312 = vmatpush.msra.mxu1 %v2153_v21  ;;  %v2197_v35 = vld [vmem:[#allocation9 + $0x138] sm:$0xff]  ;;  %v2199_v36 = vld [vmem:[#allocation9 + $0xe0] sm:$0xff]  ;;  %v2203_v37 = vld [vmem:[#allocation9 + $0x148] sm:$0xff] }
  0x24   :  { %334 = vmatpush.msrb.mxu2 %v2157_v22  ;;  %354 = vmatpush.msrb.mxu3 %v2159_v23  ;;  %v2205_v38 = vld [vmem:[#allocation9 + $0x110] sm:$0xff]  ;;  %v2209_v39 = vld [vmem:[#allocation9 + $0x118] sm:$0xff]  ;;  %v2211_v40 = vld [vmem:[#allocation9 + $0xc0] sm:$0xff] }
  0x25   :  { %296 = vmatpush.msra.mxu0 %v2163_v24  ;;  %313 = vmatpush.msra.mxu1 %v2165_v25  ;;  %v2215_v41 = vld [vmem:[#allocation9 + $0x128] sm:$0xff]  ;;  %v2217_v42 = vld [vmem:[#allocation9 + $0xf0] sm:$0xff]  ;;  %v2221_v43 = vld [vmem:[#allocation9 + $0xf8] sm:$0xff] }
  0x26   :  { %1604 = vmatmul.msk.f32.vlgmr.msrb.gmra.mxu1 %vm127_vm0, %v108_v8  ;;  %335 = vmatpush.msrb.mxu2 %v2169_v26  ;;  %v2223_v44 = vld [vmem:[#allocation9 + $0xa0] sm:$0xff]  ;;  %v2227_v45 = vld [vmem:[#allocation9 + $0x108] sm:$0xff]  ;;  %v2229_v46 = vld [vmem:[#allocation9 + $0xd0] sm:$0xff] }
  0x27   :  { %355 = vmatpush.msrb.mxu3 %v2173_v27  ;;  %297 = vmatpush.msra.mxu0 %v2175_v28  ;;  %v2233_v47 = vld [vmem:[#allocation9 + $0xd8] sm:$0xff]  ;;  %v2235_v48 = vld [vmem:[#allocation9 + $0x80] sm:$0xff]  ;;  %v2239_v49 = vld [vmem:[#allocation9 + $0xe8] sm:$0xff] }
  0x28   :  { %314 = vmatpush.msra.mxu1 %v2179_v29  ;;  %336 = vmatpush.msrb.mxu2 %v2181_v30  ;;  %3053 = vst [vmem:[#allocation21_spill] sm:$0xff] %v2235_v48  ;;  %v2241_v50 = vld [vmem:[#allocation9 + $0xb0] sm:$0xff]  ;;  %v2245_v51 = vld [vmem:[#allocation9 + $0xb8] sm:$0xff]  ;;  %v2247_v52 = vld [vmem:[#allocation9 + $0x60] sm:$0xff] }
  0x29   :  { %356 = vmatpush.msrb.mxu3 %v2185_v31  ;;  %298 = vmatpush.msra.mxu0 %v2187_v32  ;;  %3054 = vst [vmem:[#allocation22_spill] sm:$0xff] %v2241_v50  ;;  %v2251_v53 = vld [vmem:[#allocation9 + $0xc8] sm:$0xff]  ;;  %v2253_v54 = vld [vmem:[#allocation9 + $0x90] sm:$0xff]  ;;  %v2257_v55 = vld [vmem:[#allocation9 + $0x98] sm:$0xff] }
  0x2a   :  { %315 = vmatpush.msra.mxu1 %v2191_v33  ;;  %337 = vmatpush.msrb.mxu2 %v2193_v34  ;;  %3055 = vst [vmem:[#allocation23_spill] sm:$0xff] %v2245_v51  ;;  %v2259_v56 = vld [vmem:[#allocation9 + $0x40] sm:$0xff]  ;;  %v2263_v57 = vld [vmem:[#allocation9 + $0xa8] sm:$0xff]  ;;  %v2265_v58 = vld [vmem:[#allocation9 + $0x70] sm:$0xff] }
  0x2b   :  { %357 = vmatpush.msrb.mxu3 %v2197_v35  ;;  %299 = vmatpush.msra.mxu0 %v2199_v36  ;;  %3056 = vst [vmem:[#allocation24_spill] sm:$0xff] %v2247_v52  ;;  %v2269_v59 = vld [vmem:[#allocation9 + $0x78] sm:$0xff]  ;;  %v2271_v60 = vld [vmem:[#allocation9 + $0x20] sm:$0xff]  ;;  %v2275_v61 = vld [vmem:[#allocation9 + $0x88] sm:$0xff] }
  0x2c   :  { %316 = vmatpush.msra.mxu1 %v2203_v37  ;;  %338 = vmatpush.msrb.mxu2 %v2205_v38  ;;  %3057 = vst [vmem:[#allocation25_spill] sm:$0xff] %v2253_v54  ;;  %v2277_v62 = vld [vmem:[#allocation9 + $0x50] sm:$0xff]  ;;  %v2281_v63 = vld [vmem:[#allocation9 + $0x58] sm:$0xff]  ;;  %v2283_v0 = vld [vmem:[#allocation9] sm:$0xff] }
  0x2d   :  { %358 = vmatpush.msrb.mxu3 %v2209_v39  ;;  %300 = vmatpush.msra.mxu0 %v2211_v40  ;;  %3058 = vst [vmem:[#allocation26_spill] sm:$0xff] %v2257_v55  ;;  %v2287_v1 = vld [vmem:[#allocation9 + $0x68] sm:$0xff]  ;;  %v215_v2 = vld [vmem:[%s2949_s6] sm:$0x1]  ;;  %v2296_v5 = vld [vmem:[#allocation9 + $0x38] sm:$0xff] }
  0x2e   :  { %317 = vmatpush.msra.mxu1 %v2215_v41  ;;  %339 = vmatpush.msrb.mxu2 %v2217_v42  ;;  %3059 = vst [vmem:[#allocation27_spill] sm:$0xff] %v2259_v56  ;;  %v2294_v4 = vld [vmem:[#allocation9 + $0x30] sm:$0xff]  ;;  %v2300_v6 = vld [vmem:[#allocation9 + $0x48] sm:$0xff]  ;;  %v2305_v9 = vld [vmem:[#allocation9 + $0x18] sm:$0xff] }
  0x2f   :  { %359 = vmatpush.msrb.mxu3 %v2221_v43  ;;  %301 = vmatpush.msra.mxu0 %v2223_v44  ;;  %3060 = vst [vmem:[#allocation28_spill] sm:$0xff] %v2263_v57  ;;  %v2303_v8 = vld [vmem:[#allocation9 + $0x10] sm:$0xff]  ;;  %v2309_v13 = vld [vmem:[#allocation9 + $0x28] sm:$0xff] }
  0x30   :  { %318 = vmatpush.msra.mxu1 %v2227_v45  ;;  %340 = vmatpush.msrb.mxu2 %v2229_v46  ;;  %3061 = vst [vmem:[#allocation29_spill] sm:$0xff] %v2265_v58 }
  0x31   :  { %360 = vmatpush.msrb.mxu3 %v2233_v47  ;;  %302 = vmatpush.msra.mxu0 %v2235_v48  ;;  %3062 = vst [vmem:[#allocation30_spill] sm:$0xff] %v2269_v59 }
  0x32   :  { %319 = vmatpush.msra.mxu1 %v2239_v49  ;;  %341 = vmatpush.msrb.mxu2 %v2241_v50  ;;  %3063 = vst [vmem:[#allocation31_spill] sm:$0xff] %v2271_v60 }
  0x33   :  { %361 = vmatpush.msrb.mxu3 %v2245_v51  ;;  %303 = vmatpush.msra.mxu0 %v2247_v52  ;;  %3064 = vst [vmem:[#allocation32_spill] sm:$0xff] %v2275_v61 }
  0x34   :  { %320 = vmatpush.msra.mxu1 %v2251_v53  ;;  %342 = vmatpush.msrb.mxu2 %v2253_v54  ;;  %3065 = vst [vmem:[#allocation33_spill] sm:$0xff] %v2277_v62 }
  0x35   :  { %362 = vmatpush.msrb.mxu3 %v2257_v55  ;;  %304 = vmatpush.msra.mxu0 %v2259_v56  ;;  %3066 = vst [vmem:[#allocation34_spill] sm:$0xff] %v2281_v63 }
  0x36   :  { %321 = vmatpush.msra.mxu1 %v2263_v57  ;;  %343 = vmatpush.msrb.mxu2 %v2265_v58  ;;  %3067 = vst [vmem:[#allocation35_spill] sm:$0xff] %v2283_v0 }
  0x37   :  { %363 = vmatpush.msrb.mxu3 %v2269_v59  ;;  %305 = vmatpush.msra.mxu0 %v2271_v60  ;;  %3068 = vst [vmem:[#allocation36_spill] sm:$0xff] %v2287_v1 }
  0x38   :  { %322 = vmatpush.msra.mxu1 %v2275_v61  ;;  %344 = vmatpush.msrb.mxu2 %v2277_v62  ;;  %3069 = vst [vmem:[#allocation37_spill] sm:$0xff] %v2294_v4 }
  0x39   :  { %3070 = vst [vmem:[#allocation38_spill] sm:$0xff] %v2296_v5  ;;  %364 = vmatpush.msrb.mxu3 %v2281_v63  ;;  %306 = vmatpush.msra.mxu0 %v2283_v0  ;;  %v2315_v0 = vld [vmem:[#allocation9 + $0x8] sm:$0xff] }
  0x3a   :  { %3071 = vst [vmem:[#allocation39_spill] sm:$0xff] %v2300_v6  ;;  %323 = vmatpush.msra.mxu1 %v2287_v1  ;;  %307 = vmatmul.f32.vlgmr.msra.gmra.mxu0 %v215_v2 }
  0x3b   :  { %3072 = vst [vmem:[#allocation40_spill] sm:$0xff] %v2303_v8  ;;  %345 = vmatpush.msrb.mxu2 %v2294_v4  ;;  %365 = vmatpush.msrb.mxu3 %v2296_v5 }
  0x3c   :  { %3073 = vst [vmem:[#allocation41_spill] sm:$0xff] %v2305_v9  ;;  %324 = vmatpush.msra.mxu1 %v2300_v6  ;;  %445 = vmatpush.msrb.mxu0 %v2119_v3 }
  0x3d   :  { %3074 = vst [vmem:[#allocation42_spill] sm:$0xff] %v2309_v13  ;;  %346 = vmatpush.msrb.mxu2 %v2303_v8  ;;  %366 = vmatpush.msrb.mxu3 %v2305_v9 }
  0x3e   :  { %3075 = vst [vmem:[#allocation43_spill] sm:$0xff] %v2315_v0  ;;  %325 = vmatpush.msra.mxu1 %v2309_v13  ;;  %347 = vmatmul.f32.vlgmr.msrb.gmra.mxu2 %v215_v2 }
  0x3f   :  { %367 = vmatmul.f32.vlgmr.msrb.gmra.mxu3 %v215_v2  ;;  %485 = vmatpush.msra.mxu2 %v2124_v10 }
  0x40   :  { %326 = vmatpush.msra.mxu1 %v2315_v0  ;;  %505 = vmatpush.msra.mxu3 %v2126_v11 }
  0x41   :  { %327 = vmatmul.f32.vlgmr.msra.gmra.mxu1 %v215_v2  ;;  %446 = vmatpush.msrb.mxu0 %v2122_v7  ;;  %v3076_v2 = vld [vmem:[#allocation35_spill] sm:$0xff] }
  0x42   :  { %465 = vmatpush.msrb.mxu1 %v2142_v17  ;;  %486 = vmatpush.msra.mxu2 %v2134_v14 }
  0x43   :  { %506 = vmatpush.msra.mxu3 %v2136_v15  ;;  %447 = vmatpush.msrb.mxu0 %v2129_v12 }
  0x44   :  { %466 = vmatpush.msrb.mxu1 %v2153_v21  ;;  %487 = vmatpush.msra.mxu2 %v2145_v18 }
  0x45   :  { %507 = vmatpush.msra.mxu3 %v2147_v19  ;;  %448 = vmatpush.msrb.mxu0 %v2140_v16 }
  0x46   :  { %467 = vmatpush.msrb.mxu1 %v2165_v25  ;;  %488 = vmatpush.msra.mxu2 %v2157_v22 }
  0x47   :  { %508 = vmatpush.msra.mxu3 %v2159_v23  ;;  %449 = vmatpush.msrb.mxu0 %v2151_v20 }
  0x48   :  { %468 = vmatpush.msrb.mxu1 %v2179_v29  ;;  %489 = vmatpush.msra.mxu2 %v2169_v26 }
  0x49   :  { %509 = vmatpush.msra.mxu3 %v2173_v27  ;;  %450 = vmatpush.msrb.mxu0 %v2163_v24 }
  0x4a   :  { %469 = vmatpush.msrb.mxu1 %v2191_v33  ;;  %490 = vmatpush.msra.mxu2 %v2181_v30 }
  0x4b   :  { %510 = vmatpush.msra.mxu3 %v2185_v31  ;;  %451 = vmatpush.msrb.mxu0 %v2175_v28 }
  0x4c   :  { %470 = vmatpush.msrb.mxu1 %v2203_v37  ;;  %491 = vmatpush.msra.mxu2 %v2193_v34 }
  0x4d   :  { %511 = vmatpush.msra.mxu3 %v2197_v35  ;;  %452 = vmatpush.msrb.mxu0 %v2187_v32 }
  0x4e   :  { %471 = vmatpush.msrb.mxu1 %v2215_v41  ;;  %492 = vmatpush.msra.mxu2 %v2205_v38 }
  0x4f   :  { %512 = vmatpush.msra.mxu3 %v2209_v39  ;;  %453 = vmatpush.msrb.mxu0 %v2199_v36 }
  0x50   :  { %472 = vmatpush.msrb.mxu1 %v2227_v45  ;;  %493 = vmatpush.msra.mxu2 %v2217_v42 }
  0x51   :  { %513 = vmatpush.msra.mxu3 %v2221_v43  ;;  %454 = vmatpush.msrb.mxu0 %v2211_v40 }
  0x52   :  { %473 = vmatpush.msrb.mxu1 %v2239_v49  ;;  %494 = vmatpush.msra.mxu2 %v2229_v46 }
  0x53   :  { %514 = vmatpush.msra.mxu3 %v2233_v47  ;;  %455 = vmatpush.msrb.mxu0 %v2223_v44 }
  0x54   :  { %474 = vmatpush.msrb.mxu1 %v2251_v53  ;;  %495 = vmatpush.msra.mxu2 %v2241_v50 }
  0x55   :  { %515 = vmatpush.msra.mxu3 %v2245_v51  ;;  %456 = vmatpush.msrb.mxu0 %v2235_v48 }
  0x56   :  { %475 = vmatpush.msrb.mxu1 %v2263_v57  ;;  %496 = vmatpush.msra.mxu2 %v2253_v54 }
  0x57   :  { %516 = vmatpush.msra.mxu3 %v2257_v55  ;;  %457 = vmatpush.msrb.mxu0 %v2247_v52 }
  0x58   :  { %476 = vmatpush.msrb.mxu1 %v2275_v61  ;;  %497 = vmatpush.msra.mxu2 %v2265_v58 }
  0x59   :  { %517 = vmatpush.msra.mxu3 %v2269_v59  ;;  %458 = vmatpush.msrb.mxu0 %v2259_v56 }
  0x5a   :  { %477 = vmatpush.msrb.mxu1 %v2287_v1  ;;  %498 = vmatpush.msra.mxu2 %v2277_v62 }
  0x5b   :  { %518 = vmatpush.msra.mxu3 %v2281_v63  ;;  %459 = vmatpush.msrb.mxu0 %v2271_v60 }
  0x5c   :  { %478 = vmatpush.msrb.mxu1 %v2300_v6  ;;  %499 = vmatpush.msra.mxu2 %v2294_v4 }
  0x5d   :  { %519 = vmatpush.msra.mxu3 %v2296_v5  ;;  %460 = vmatpush.msrb.mxu0 %v3076_v2 }
  0x5e   :  { %479 = vmatpush.msrb.mxu1 %v2309_v13  ;;  %500 = vmatpush.msra.mxu2 %v2303_v8 }
  0x5f   :  { %520 = vmatpush.msra.mxu3 %v2305_v9  ;;  %599 = vmatpush.msra.mxu0 %v2119_v3 }
  0x60   :  { %480 = vmatpush.msrb.mxu1 %v2315_v0  ;;  %639 = vmatpush.msrb.mxu2 %v2124_v10 }
  0x61   :  { %659 = vmatpush.msrb.mxu3 %v2126_v11  ;;  %600 = vmatpush.msra.mxu0 %v2122_v7 }
  0x62   :  { %619 = vmatpush.msra.mxu1 %v2142_v17  ;;  %640 = vmatpush.msrb.mxu2 %v2134_v14 }
  0x63   :  { %660 = vmatpush.msrb.mxu3 %v2136_v15  ;;  %601 = vmatpush.msra.mxu0 %v2129_v12 }
  0x64   :  { %620 = vmatpush.msra.mxu1 %v2153_v21  ;;  %641 = vmatpush.msrb.mxu2 %v2145_v18 }
  0x65   :  { %661 = vmatpush.msrb.mxu3 %v2147_v19  ;;  %602 = vmatpush.msra.mxu0 %v2140_v16 }
  0x66   :  { %621 = vmatpush.msra.mxu1 %v2165_v25  ;;  %642 = vmatpush.msrb.mxu2 %v2157_v22 }
  0x67   :  { %662 = vmatpush.msrb.mxu3 %v2159_v23  ;;  %603 = vmatpush.msra.mxu0 %v2151_v20 }
  0x68   :  { %622 = vmatpush.msra.mxu1 %v2179_v29  ;;  %643 = vmatpush.msrb.mxu2 %v2169_v26 }
  0x69   :  { %663 = vmatpush.msrb.mxu3 %v2173_v27  ;;  %604 = vmatpush.msra.mxu0 %v2163_v24 }
  0x6a   :  { %623 = vmatpush.msra.mxu1 %v2191_v33  ;;  %644 = vmatpush.msrb.mxu2 %v2181_v30 }
  0x6b   :  { %664 = vmatpush.msrb.mxu3 %v2185_v31  ;;  %605 = vmatpush.msra.mxu0 %v2175_v28 }
  0x6c   :  { %624 = vmatpush.msra.mxu1 %v2203_v37  ;;  %645 = vmatpush.msrb.mxu2 %v2193_v34 }
  0x6d   :  { %665 = vmatpush.msrb.mxu3 %v2197_v35  ;;  %606 = vmatpush.msra.mxu0 %v2187_v32 }
  0x6e   :  { %625 = vmatpush.msra.mxu1 %v2215_v41  ;;  %646 = vmatpush.msrb.mxu2 %v2205_v38 }
  0x6f   :  { %666 = vmatpush.msrb.mxu3 %v2209_v39  ;;  %607 = vmatpush.msra.mxu0 %v2199_v36 }
  0x70   :  { %626 = vmatpush.msra.mxu1 %v2227_v45  ;;  %647 = vmatpush.msrb.mxu2 %v2217_v42 }
  0x71   :  { %667 = vmatpush.msrb.mxu3 %v2221_v43  ;;  %608 = vmatpush.msra.mxu0 %v2211_v40 }
  0x72   :  { %627 = vmatpush.msra.mxu1 %v2239_v49  ;;  %648 = vmatpush.msrb.mxu2 %v2229_v46 }
  0x73   :  { %668 = vmatpush.msrb.mxu3 %v2233_v47  ;;  %609 = vmatpush.msra.mxu0 %v2223_v44 }
  0x74   :  { %628 = vmatpush.msra.mxu1 %v2251_v53  ;;  %649 = vmatpush.msrb.mxu2 %v2241_v50 }
  0x75   :  { %669 = vmatpush.msrb.mxu3 %v2245_v51  ;;  %610 = vmatpush.msra.mxu0 %v2235_v48 }
  0x76   :  { %629 = vmatpush.msra.mxu1 %v2263_v57  ;;  %650 = vmatpush.msrb.mxu2 %v2253_v54 }
  0x77   :  { %670 = vmatpush.msrb.mxu3 %v2257_v55  ;;  %611 = vmatpush.msra.mxu0 %v2247_v52 }
  0x78   :  { %630 = vmatpush.msra.mxu1 %v2275_v61  ;;  %651 = vmatpush.msrb.mxu2 %v2265_v58 }
  0x79   :  { %671 = vmatpush.msrb.mxu3 %v2269_v59  ;;  %612 = vmatpush.msra.mxu0 %v2259_v56 }
  0x7a   :  { %631 = vmatpush.msra.mxu1 %v2287_v1  ;;  %652 = vmatpush.msrb.mxu2 %v2277_v62  ;;  %v117_v62 = vld [vmem:[#allocation8] sm:$0xf] }
  0x7b   :  { %672 = vmatpush.msrb.mxu3 %v2281_v63  ;;  %613 = vmatpush.msra.mxu0 %v2271_v60  ;;  %v121_v60 = vperm.slane %v117_v62, 2  ;;  %v122_v59 = vperm.slane %v117_v62, 3 }
  0x7c   :  { %632 = vmatpush.msra.mxu1 %v2300_v6  ;;  %653 = vmatpush.msrb.mxu2 %v2294_v4  ;;  %v119_v6 = vperm.slane %v117_v62, 0  ;;  %v120_v4 = vperm.slane %v117_v62, 1 }
  0x7d   :  { %673 = vmatpush.msrb.mxu3 %v2296_v5  ;;  %614 = vmatpush.msra.mxu0 %v3076_v2 }
  0x7e   :  { %633 = vmatpush.msra.mxu1 %v2309_v13  ;;  %654 = vmatpush.msrb.mxu2 %v2303_v8 }
  0x7f   :  { %674 = vmatpush.msrb.mxu3 %v2305_v9 }
  0x80   :  { %634 = vmatpush.msra.mxu1 %v2315_v0 }
  0x99   :  { %v148_v56 = vpop.f32.mrf.mxu1 }
  0x9a   :  { %v149_v63 = vadd.f32 %v148_v56, %v119_v6 }
  0x9c   :  { %211 = vst [vmem:[#allocation2] sm:$0xff] %v149_v63 }
  0xa1   :  { %v188_v58 = vpop.f32.mrf.mxu2 }
  0xa2   :  { %v189_v13 = vadd.f32 %v188_v58, %v121_v60  ;;  %v208_v1 = vpop.f32.mrf.mxu3 }
  0xa3   :  { %v168_v5 = vpop.f32.mrf.mxu1  ;;  %v209_v52 = vadd.f32 %v208_v1, %v122_v59 }
  0xa4   :  { %v169_v2 = vadd.f32 %v168_v5, %v120_v4  ;;  %213 = vst [vmem:[#allocation2 + $0x10] sm:$0xff] %v189_v13 }
  0xa5   :  { %214 = vst [vmem:[#allocation2 + $0x18] sm:$0xff] %v209_v52 }
  0xa6   :  { %212 = vst [vmem:[#allocation2 + $0x8] sm:$0xff] %v169_v2 }
  0xad   :  { %v281_v8 = vld [vmem:[#allocation2] ss:$8 sm:$0xf] }
  0xae   :  { %v283_v0 = vperm.slane %v281_v8, 0  ;;  %v284_v56 = vperm.slane %v281_v8, 1  ;;  %v286_v62 = vperm.slane %v281_v8, 3  ;;  %v285_v2 = vperm.slane %v281_v8, 2 }
  0xb7   :  { %v308_v9 = vpop.f32.mrf.mxu0 }
  0xb8   :  { %v309_v55 = vadd.f32 %v308_v9, %v283_v0 }
  0xba   :  { %v1607_v54 = vmul.f32 -1.442695, %v309_v55 }
  0xbc   :  { %1643 = vpow2.f32 %v1607_v54 }
  0xbe   :  { %v328_v63 = vpop.f32.mrf.mxu1 }
  0xbf   :  { %v329_v6 = vadd.f32 %v328_v63, %v284_v56 }
  0xc1   :  { %v1608_v61 = vmul.f32 -1.442695, %v329_v6  ;;  %v348_v0 = vpop.f32.mrf.mxu2 }
  0xc2   :  { %v1644_v48 = vpop.eup %1643  ;;  %v368_v58 = vpop.f32.mrf.mxu3  ;;  %v349_v6 = vadd.f32 %v348_v0, %v285_v2 }
  0xc3   :  { %v374_v60 = vadd.f32 1.0, %v1644_v48  ;;  %1645 = vpow2.f32 %v1608_v61  ;;  %v369_v59 = vadd.f32 %v368_v58, %v286_v62 }
  0xc5   :  { %1647 = vrcp.f32 %v374_v60  ;;  %v1609_v1 = vmul.f32 -1.442695, %v369_v59  ;;  %v386_v62 = vand.u32 2147483648, %v374_v60  ;;  %vm380_vm2 = vweird.f32 %v374_v60 }
  0xc6   :  { %v384_v59 = vand.u32 2147483647, %v374_v60 }
  0xc7   :  { %1649 = vpow2.f32 %v1609_v1  ;;  %v387_v0 = vor.u32 1.1754944e-38, %v386_v62 }
  0xc8   :  { %vm385_vm6 = vcmp.eq.f32.partialorder %v384_v59, 8.507059e+37 }
  0xc9   :  { %v1646_v52 = vpop.eup %1645 }
  0xca   :  { %v393_v4 = vadd.f32 1.0, %v1646_v52 }
  0xcb   :  { %v1648_v5 = vpop.eup %1647 }
  0xcc   :  { %v376_v13 = vmul.f32 %v1648_v5, %v374_v60  ;;  %1651 = vrcp.f32 %v393_v4  ;;  %vm381_vm1 = vweird.f32 %v1648_v5  ;;  %v405_v1 = vand.u32 2147483648, %v393_v4 }
  0xcd   :  { %v1650_v55 = vpop.eup %1649  ;;  %vm2446_vm3 = vmor %vm380_vm2, %vm381_vm1  ;;  %vm399_vm5 = vweird.f32 %v393_v4 }
  0xce   :  { %v377_v54 = vsub.f32 1.0, %v376_v13  ;;  %v413_v9 = vadd.f32 1.0, %v1650_v55  ;;  %v406_v60 = vor.u32 1.1754944e-38, %v405_v1 }
  0xd0   :  { %v378_v56 = vmul.f32 %v1648_v5, %v377_v54  ;;  %1653 = vrcp.f32 %v413_v9  ;;  %v403_v54 = vand.u32 2147483647, %v393_v4  ;;  %v425_v59 = vand.u32 2147483648, %v413_v9 }
  0xd1   :  { %1655 = vtanh.f32 %v349_v6  ;;  %vm419_vm10 = vweird.f32 %v413_v9  ;;  %v423_v1 = vand.u32 2147483647, %v413_v9 }
  0xd2   :  { %v1652_v63 = vpop.eup %1651  ;;  %v379_v61 = vadd.f32 %v1648_v5, %v378_v56  ;;  %vm404_vm8 = vcmp.eq.f32.partialorder %v403_v54, 8.507059e+37 }
  0xd3   :  { %v395_v48 = vmul.f32 %v1652_v63, %v393_v4  ;;  %vm400_vm4 = vweird.f32 %v1652_v63  ;;  %vm424_vm12 = vcmp.eq.f32.partialorder %v423_v1, 8.507059e+37  ;;  %v3100_v1 = vld [vmem:[#allocation40_spill] sm:$0xff] }
  0xd4   :  { %v383_v8 = vsel %vm2446_vm3, %v1648_v5, %v379_v61  ;;  %vm401_vm7 = vmor %vm399_vm5, %vm400_vm4 }
  0xd5   :  { %v396_v58 = vsub.f32 1.0, %v395_v48  ;;  %v216_v48 = vld [vmem:[%s2950_s7] sm:$0x1]  ;;  %v388_v51 = vsel %vm385_vm6, %v387_v0, %v383_v8  ;;  %v426_v8 = vor.u32 1.1754944e-38, %v425_v59  ;;  %v3099_v59 = vld [vmem:[#allocation43_spill] sm:$0xff] }
  0xd6   :  { %v1654_v13 = vpop.eup %1653 }
  0xd7   :  { %v397_v55 = vmul.f32 %v1652_v63, %v396_v58  ;;  %v415_v2 = vmul.f32 %v1654_v13, %v413_v9  ;;  %v1656_v58 = vpop.eup %1655  ;;  %vm420_vm9 = vweird.f32 %v1654_v13  ;;  %v3087_v9 = vld [vmem:[#allocation36_spill] sm:$0xff] }
  0xd8   :  { %v430_v61 = vmul.f32 %v1656_v58, %v388_v51  ;;  %vm421_vm11 = vmor %vm419_vm10, %vm420_vm9  ;;  %v3085_v51 = vld [vmem:[#allocation26_spill] sm:$0xff]  ;;  %v3094_v58 = vld [vmem:[#allocation31_spill] sm:$0xff] }
  0xd9   :  { %v398_v56 = vadd.f32 %v1652_v63, %v397_v55  ;;  %v416_v6 = vsub.f32 1.0, %v415_v2  ;;  %v3089_v2 = vld [vmem:[#allocation30_spill] sm:$0xff] }
  0xdb   :  { %v402_v50 = vsel %vm401_vm7, %v1652_v63, %v398_v56  ;;  %v417_v52 = vmul.f32 %v1654_v13, %v416_v6  ;;  %v3090_v56 = vld [vmem:[#allocation27_spill] sm:$0xff]  ;;  %v3093_v6 = vld [vmem:[#allocation34_spill] sm:$0xff] }
  0xdc   :  { %v407_v57 = vsel %vm404_vm8, %v406_v60, %v402_v50  ;;  %v3084_v50 = vld [vmem:[#allocation25_spill] sm:$0xff]  ;;  %v3091_v60 = vld [vmem:[#allocation39_spill] sm:$0xff] }
  0xdd   :  { %v429_v5 = vmul.f32 %v407_v57, %v216_v48  ;;  %v418_v4 = vadd.f32 %v1654_v13, %v417_v52  ;;  %v3086_v57 = vld [vmem:[#allocation24_spill] sm:$0xff]  ;;  %v3092_v48 = vld [vmem:[#allocation33_spill] sm:$0xff]  ;;  %v3095_v52 = vld [vmem:[#allocation42_spill] sm:$0xff] }
  0xdf   :  { %v2455_v62 = vadd.f32 %v430_v61, %v429_v5  ;;  %v422_v55 = vsel %vm421_vm11, %v1654_v13, %v418_v4  ;;  %v3088_v13 = vld [vmem:[#allocation29_spill] sm:$0xff]  ;;  %v3097_v61 = vld [vmem:[#allocation38_spill] sm:$0xff]  ;;  %v3098_v4 = vld [vmem:[#allocation35_spill] sm:$0xff] }
  0xe0   :  { %v427_v54 = vsel %vm424_vm12, %v426_v8, %v422_v55  ;;  %v3096_v5 = vld [vmem:[#allocation37_spill] sm:$0xff] }
  0xe1   :  { %1657 = vtanh.f32 %v2455_v62  ;;  %v3101_v55 = vld [vmem:[#allocation41_spill] sm:$0xff] }
  0xe2   :  { %v435_v8 = vld [vmem:[#allocation2 + $0x1] ss:$8 sm:$0xf] }
  0xe7   :  { %v1658_v63 = vpop.eup %1657 }
  0xe8   :  { %v433_v0 = vmul.f32 %v1658_v63, %v427_v54  ;;  %v437_v63 = vperm.slane %v435_v8, 0  ;;  %v438_v54 = vperm.slane %v435_v8, 1 }
  0xea   :  { %461 = vmatmul.f32.vlgmr.msrb.gmra.mxu0 %v433_v0  ;;  %481 = vmatmul.f32.vlgmr.msrb.gmra.mxu1 %v433_v0 }
  0xeb   :  { %501 = vmatmul.f32.vlgmr.msra.gmra.mxu2 %v433_v0  ;;  %521 = vmatmul.f32.vlgmr.msra.gmra.mxu3 %v433_v0 }
  0xec   :  { %753 = vmatpush.msrb.mxu0 %v2119_v3  ;;  %773 = vmatpush.msrb.mxu1 %v2142_v17  ;;  %v3079_v3 = vld [vmem:[#allocation28_spill] sm:$0xff] }
  0xed   :  { %793 = vmatpush.msra.mxu2 %v2124_v10  ;;  %813 = vmatpush.msra.mxu3 %v2126_v11  ;;  %v3081_v10 = vld [vmem:[#allocation23_spill] sm:$0xff]  ;;  %v3082_v11 = vld [vmem:[#allocation21_spill] sm:$0xff] }
  0xee   :  { %754 = vmatpush.msrb.mxu0 %v2122_v7  ;;  %774 = vmatpush.msrb.mxu1 %v2153_v21  ;;  %v3080_v7 = vld [vmem:[#allocation22_spill] sm:$0xff] }
  0xef   :  { %794 = vmatpush.msra.mxu2 %v2134_v14  ;;  %814 = vmatpush.msra.mxu3 %v2136_v15 }
  0xf0   :  { %755 = vmatpush.msrb.mxu0 %v2129_v12  ;;  %775 = vmatpush.msrb.mxu1 %v2165_v25  ;;  %v3083_v12 = vld [vmem:[#allocation32_spill] sm:$0xff] }
  0xf1   :  { %795 = vmatpush.msra.mxu2 %v2145_v18  ;;  %815 = vmatpush.msra.mxu3 %v2147_v19 }
  0xf2   :  { %756 = vmatpush.msrb.mxu0 %v2140_v16  ;;  %776 = vmatpush.msrb.mxu1 %v2179_v29 }
  0xf3   :  { %796 = vmatpush.msra.mxu2 %v2157_v22  ;;  %816 = vmatpush.msra.mxu3 %v2159_v23 }
  0xf4   :  { %757 = vmatpush.msrb.mxu0 %v2151_v20  ;;  %777 = vmatpush.msrb.mxu1 %v2191_v33 }
  0xf5   :  { %797 = vmatpush.msra.mxu2 %v2169_v26  ;;  %817 = vmatpush.msra.mxu3 %v2173_v27 }
  0xf6   :  { %758 = vmatpush.msrb.mxu0 %v2163_v24  ;;  %778 = vmatpush.msrb.mxu1 %v2203_v37 }
  0xf7   :  { %798 = vmatpush.msra.mxu2 %v2181_v30  ;;  %818 = vmatpush.msra.mxu3 %v2185_v31 }
  0xf8   :  { %759 = vmatpush.msrb.mxu0 %v2175_v28  ;;  %779 = vmatpush.msrb.mxu1 %v2215_v41 }
  0xf9   :  { %799 = vmatpush.msra.mxu2 %v2193_v34  ;;  %819 = vmatpush.msra.mxu3 %v2197_v35 }
  0xfa   :  { %760 = vmatpush.msrb.mxu0 %v2187_v32  ;;  %780 = vmatpush.msrb.mxu1 %v2227_v45 }
  0xfb   :  { %800 = vmatpush.msra.mxu2 %v2205_v38  ;;  %820 = vmatpush.msra.mxu3 %v2209_v39 }
  0xfc   :  { %761 = vmatpush.msrb.mxu0 %v2199_v36  ;;  %781 = vmatpush.msrb.mxu1 %v2239_v49 }
  0xfd   :  { %801 = vmatpush.msra.mxu2 %v2217_v42  ;;  %821 = vmatpush.msra.mxu3 %v2221_v43 }
  0xfe   :  { %762 = vmatpush.msrb.mxu0 %v2211_v40  ;;  %782 = vmatpush.msrb.mxu1 %v2251_v53 }
  0xff   :  { %802 = vmatpush.msra.mxu2 %v2229_v46  ;;  %822 = vmatpush.msra.mxu3 %v2233_v47 }
 0x100   :  { %763 = vmatpush.msrb.mxu0 %v2223_v44  ;;  %783 = vmatpush.msrb.mxu1 %v3079_v3 }
 0x101   :  { %803 = vmatpush.msra.mxu2 %v3080_v7  ;;  %823 = vmatpush.msra.mxu3 %v3081_v10 }
 0x102   :  { %764 = vmatpush.msrb.mxu0 %v3082_v11  ;;  %784 = vmatpush.msrb.mxu1 %v3083_v12 }
 0x103   :  { %804 = vmatpush.msra.mxu2 %v3084_v50  ;;  %824 = vmatpush.msra.mxu3 %v3085_v51 }
 0x104   :  { %765 = vmatpush.msrb.mxu0 %v3086_v57  ;;  %785 = vmatpush.msrb.mxu1 %v3087_v9  ;;  %v439_v57 = vperm.slane %v435_v8, 2 }
 0x105   :  { %805 = vmatpush.msra.mxu2 %v3088_v13  ;;  %825 = vmatpush.msra.mxu3 %v3089_v2 }
 0x106   :  { %766 = vmatpush.msrb.mxu0 %v3090_v56  ;;  %786 = vmatpush.msrb.mxu1 %v3091_v60 }
 0x107   :  { %806 = vmatpush.msra.mxu2 %v3092_v48  ;;  %826 = vmatpush.msra.mxu3 %v3093_v6 }
 0x108   :  { %767 = vmatpush.msrb.mxu0 %v3094_v58  ;;  %787 = vmatpush.msrb.mxu1 %v3095_v52 }
 0x109   :  { %807 = vmatpush.msra.mxu2 %v3096_v5  ;;  %827 = vmatpush.msra.mxu3 %v3097_v61  ;;  %v440_v61 = vperm.slane %v435_v8, 3 }
 0x10a   :  { %768 = vmatpush.msrb.mxu0 %v3098_v4  ;;  %788 = vmatpush.msrb.mxu1 %v3099_v59 }
 0x10b   :  { %808 = vmatpush.msra.mxu2 %v3100_v1  ;;  %828 = vmatpush.msra.mxu3 %v3101_v55 }
 0x167   :  { %v462_v0 = vpop.f32.mrf.mxu0  ;;  %v482_v6 = vpop.f32.mrf.mxu1 }
 0x168   :  { %v463_v58 = vadd.f32 %v462_v0, %v437_v63  ;;  %v483_v48 = vadd.f32 %v482_v6, %v438_v54 }
 0x16a   :  { %v1610_v52 = vmul.f32 -1.442695, %v463_v58  ;;  %v1611_v60 = vmul.f32 -1.442695, %v483_v48 }
 0x16c   :  { %1659 = vpow2.f32 %v1610_v52 }
 0x16d   :  { %1661 = vpow2.f32 %v1611_v60 }
 0x16e   :  { %v522_v5 = vpop.f32.mrf.mxu3  ;;  %v502_v13 = vpop.f32.mrf.mxu2 }
 0x16f   :  { %v523_v4 = vadd.f32 %v522_v5, %v440_v61  ;;  %v503_v58 = vadd.f32 %v502_v13, %v439_v57 }
 0x171   :  { %v1612_v56 = vmul.f32 -1.442695, %v523_v4 }
 0x172   :  { %v1660_v59 = vpop.eup %1659 }
 0x173   :  { %v1662_v2 = vpop.eup %1661  ;;  %v528_v1 = vadd.f32 1.0, %v1660_v59  ;;  %1663 = vpow2.f32 %v1612_v56 }
 0x174   :  { %v547_v55 = vadd.f32 1.0, %v1662_v2 }
 0x175   :  { %1665 = vrcp.f32 %v528_v1  ;;  %v540_v61 = vand.u32 2147483648, %v528_v1  ;;  %v538_v2 = vand.u32 2147483647, %v528_v1  ;;  %vm534_vm15 = vweird.f32 %v528_v1 }
 0x176   :  { %1667 = vrcp.f32 %v547_v55  ;;  %v559_v4 = vand.u32 2147483648, %v547_v55  ;;  %v557_v0 = vand.u32 2147483647, %v547_v55  ;;  %vm553_vm0 = vweird.f32 %v547_v55 }
 0x177   :  { %v541_v57 = vor.u32 1.1754944e-38, %v540_v61  ;;  %vm539_vm3 = vcmp.eq.f32.partialorder %v538_v2, 8.507059e+37 }
 0x178   :  { %vm558_vm4 = vcmp.eq.f32.partialorder %v557_v0, 8.507059e+37 }
 0x179   :  { %v1664_v9 = vpop.eup %1663 }
 0x17a   :  { %v567_v63 = vadd.f32 1.0, %v1664_v9 }
 0x17b   :  { %v1666_v6 = vpop.eup %1665 }
 0x17c   :  { %v1668_v48 = vpop.eup %1667  ;;  %v530_v52 = vmul.f32 %v1666_v6, %v528_v1  ;;  %1669 = vrcp.f32 %v567_v63  ;;  %vm535_vm13 = vweird.f32 %v1666_v6  ;;  %v579_v61 = vand.u32 2147483648, %v567_v63 }
 0x17d   :  { %v549_v60 = vmul.f32 %v1668_v48, %v547_v55  ;;  %1671 = vtanh.f32 %v503_v58  ;;  %vm554_vm14 = vweird.f32 %v1668_v48  ;;  %vm536_vm1 = vmor %vm534_vm15, %vm535_vm13  ;;  %vm573_vm6 = vweird.f32 %v567_v63 }
 0x17e   :  { %v531_v54 = vsub.f32 1.0, %v530_v52  ;;  %vm555_vm2 = vmor %vm553_vm0, %vm554_vm14  ;;  %v560_v52 = vor.u32 1.1754944e-38, %v559_v4  ;;  %v580_v2 = vor.u32 1.1754944e-38, %v579_v61 }
 0x17f   :  { %v550_v5 = vsub.f32 1.0, %v549_v60 }
 0x180   :  { %v532_v59 = vmul.f32 %v1666_v6, %v531_v54 }
 0x181   :  { %v551_v56 = vmul.f32 %v1668_v48, %v550_v5 }
 0x182   :  { %v1670_v51 = vpop.eup %1669  ;;  %v533_v8 = vadd.f32 %v1666_v6, %v532_v59 }
 0x183   :  { %v552_v9 = vadd.f32 %v1668_v48, %v551_v56  ;;  %v569_v13 = vmul.f32 %v1670_v51, %v567_v63  ;;  %v1672_v58 = vpop.eup %1671  ;;  %vm574_vm5 = vweird.f32 %v1670_v51 }
 0x184   :  { %v537_v60 = vsel %vm536_vm1, %v1666_v6, %v533_v8  ;;  %v577_v6 = vand.u32 2147483647, %v567_v63  ;;  %vm575_vm7 = vmor %vm573_vm6, %vm574_vm5 }
 0x185   :  { %v542_v50 = vsel %vm539_vm3, %v541_v57, %v537_v60  ;;  %v556_v54 = vsel %vm555_vm2, %v1668_v48, %v552_v9  ;;  %v570_v12 = vsub.f32 1.0, %v569_v13 }
 0x186   :  { %v561_v5 = vsel %vm558_vm4, %v560_v52, %v556_v54  ;;  %v584_v11 = vmul.f32 %v1672_v58, %v542_v50  ;;  %vm578_vm8 = vcmp.eq.f32.partialorder %v577_v6, 8.507059e+37  ;;  %v2542_v50 = vld [vmem:[#allocation9 + $0x1a0] sm:$0xff] }
 0x187   :  { %v583_v10 = vmul.f32 %v561_v5, %v2455_v62  ;;  %v571_v59 = vmul.f32 %v1670_v51, %v570_v12  ;;  %v2526_v62 = vld [vmem:[#allocation9 + $0x1e0] sm:$0xff] }
 0x188   :  { %v2536_v12 = vld [vmem:[#allocation9 + $0x1c0] sm:$0xff] }
 0x189   :  { %v2523_v1 = vadd.f32 %v584_v11, %v583_v10  ;;  %v572_v55 = vadd.f32 %v1670_v51, %v571_v59  ;;  %v2530_v10 = vld [vmem:[#allocation9 + $0x1f0] sm:$0xff]  ;;  %v2533_v11 = vld [vmem:[#allocation9 + $0x1f8] sm:$0xff] }
 0x18b   :  { %1673 = vtanh.f32 %v2523_v1  ;;  %v576_v4 = vsel %vm575_vm7, %v1670_v51, %v572_v55 }
 0x18c   :  { %v581_v56 = vsel %vm578_vm8, %v580_v2, %v576_v4 }
 0x191   :  { %v1674_v48 = vpop.eup %1673 }
 0x192   :  { %v587_v0 = vmul.f32 %v1674_v48, %v581_v56 }
 0x194   :  { %615 = vmatmul.f32.vlgmr.msra.gmra.mxu0 %v587_v0  ;;  %635 = vmatmul.f32.vlgmr.msra.gmra.mxu1 %v587_v0 }
 0x195   :  { %655 = vmatmul.f32.vlgmr.msrb.gmra.mxu2 %v587_v0  ;;  %675 = vmatmul.f32.vlgmr.msrb.gmra.mxu3 %v587_v0 }
 0x196   :  { %907 = vmatpush.msra.mxu0 %v2526_v62  ;;  %927 = vmatpush.msra.mxu1 %v2142_v17  ;;  %v3105_v17 = vld [vmem:[#allocation25_spill] sm:$0xff] }
 0x197   :  { %947 = vmatpush.msrb.mxu2 %v2530_v10  ;;  %967 = vmatpush.msrb.mxu3 %v2533_v11 }
 0x198   :  { %908 = vmatpush.msra.mxu0 %v2536_v12  ;;  %928 = vmatpush.msra.mxu1 %v2153_v21  ;;  %v3109_v21 = vld [vmem:[#allocation29_spill] sm:$0xff] }
 0x199   :  { %948 = vmatpush.msrb.mxu2 %v2134_v14  ;;  %968 = vmatpush.msrb.mxu3 %v2136_v15  ;;  %v3102_v14 = vld [vmem:[#allocation23_spill] sm:$0xff]  ;;  %v3103_v15 = vld [vmem:[#allocation21_spill] sm:$0xff] }
 0x19a   :  { %909 = vmatpush.msra.mxu0 %v2542_v50  ;;  %929 = vmatpush.msra.mxu1 %v2165_v25  ;;  %v3113_v25 = vld [vmem:[#allocation33_spill] sm:$0xff] }
 0x19b   :  { %949 = vmatpush.msrb.mxu2 %v2145_v18  ;;  %969 = vmatpush.msrb.mxu3 %v2147_v19  ;;  %v3106_v18 = vld [vmem:[#allocation26_spill] sm:$0xff]  ;;  %v3107_v19 = vld [vmem:[#allocation24_spill] sm:$0xff] }
 0x19c   :  { %910 = vmatpush.msra.mxu0 %v2140_v16  ;;  %930 = vmatpush.msra.mxu1 %v2179_v29  ;;  %v3104_v16 = vld [vmem:[#allocation32_spill] sm:$0xff]  ;;  %v3117_v29 = vld [vmem:[#allocation37_spill] sm:$0xff] }
 0x19d   :  { %950 = vmatpush.msrb.mxu2 %v2157_v22  ;;  %970 = vmatpush.msrb.mxu3 %v2159_v23  ;;  %v3110_v22 = vld [vmem:[#allocation30_spill] sm:$0xff]  ;;  %v3111_v23 = vld [vmem:[#allocation27_spill] sm:$0xff] }
 0x19e   :  { %911 = vmatpush.msra.mxu0 %v2151_v20  ;;  %931 = vmatpush.msra.mxu1 %v2191_v33  ;;  %v3108_v20 = vld [vmem:[#allocation36_spill] sm:$0xff] }
 0x19f   :  { %951 = vmatpush.msrb.mxu2 %v2169_v26  ;;  %971 = vmatpush.msrb.mxu3 %v2173_v27  ;;  %v3114_v26 = vld [vmem:[#allocation34_spill] sm:$0xff]  ;;  %v3115_v27 = vld [vmem:[#allocation31_spill] sm:$0xff]  ;;  %v3121_v33 = vld [vmem:[#allocation40_spill] sm:$0xff] }
 0x1a0   :  { %912 = vmatpush.msra.mxu0 %v2163_v24  ;;  %932 = vmatpush.msra.mxu1 %v2203_v37  ;;  %v3112_v24 = vld [vmem:[#allocation39_spill] sm:$0xff] }
 0x1a1   :  { %952 = vmatpush.msrb.mxu2 %v2181_v30  ;;  %972 = vmatpush.msrb.mxu3 %v2185_v31  ;;  %v3118_v30 = vld [vmem:[#allocation38_spill] sm:$0xff]  ;;  %v3119_v31 = vld [vmem:[#allocation35_spill] sm:$0xff] }
 0x1a2   :  { %913 = vmatpush.msra.mxu0 %v2175_v28  ;;  %933 = vmatpush.msra.mxu1 %v2215_v41  ;;  %v3116_v28 = vld [vmem:[#allocation42_spill] sm:$0xff] }
 0x1a3   :  { %953 = vmatpush.msrb.mxu2 %v2193_v34  ;;  %973 = vmatpush.msrb.mxu3 %v2197_v35  ;;  %v3122_v34 = vld [vmem:[#allocation41_spill] sm:$0xff] }
 0x1a4   :  { %914 = vmatpush.msra.mxu0 %v2187_v32  ;;  %934 = vmatpush.msra.mxu1 %v2227_v45  ;;  %v3120_v32 = vld [vmem:[#allocation43_spill] sm:$0xff] }
 0x1a5   :  { %954 = vmatpush.msrb.mxu2 %v2205_v38  ;;  %974 = vmatpush.msrb.mxu3 %v2209_v39  ;;  %v589_v35 = vld [vmem:[#allocation2 + $0x2] ss:$8 sm:$0xf] }
 0x1a6   :  { %915 = vmatpush.msra.mxu0 %v2199_v36  ;;  %935 = vmatpush.msra.mxu1 %v2239_v49  ;;  %v591_v36 = vperm.slane %v589_v35, 0  ;;  %v592_v37 = vperm.slane %v589_v35, 1  ;;  %v593_v8 = vperm.slane %v589_v35, 2 }
 0x1a7   :  { %955 = vmatpush.msrb.mxu2 %v2217_v42  ;;  %975 = vmatpush.msrb.mxu3 %v2221_v43 }
 0x1a8   :  { %916 = vmatpush.msra.mxu0 %v2211_v40  ;;  %936 = vmatpush.msra.mxu1 %v2251_v53 }
 0x1a9   :  { %956 = vmatpush.msrb.mxu2 %v2229_v46  ;;  %976 = vmatpush.msrb.mxu3 %v2233_v47 }
 0x1aa   :  { %917 = vmatpush.msra.mxu0 %v2223_v44  ;;  %937 = vmatpush.msra.mxu1 %v3079_v3  ;;  %v594_v44 = vperm.slane %v589_v35, 3  ;;  %v2611_v35 = vld [vmem:[#allocation9 + $0x1c8] sm:$0xff] }
 0x1ab   :  { %957 = vmatpush.msrb.mxu2 %v3080_v7  ;;  %977 = vmatpush.msrb.mxu3 %v3102_v14 }
 0x1ac   :  { %918 = vmatpush.msra.mxu0 %v3103_v15  ;;  %938 = vmatpush.msra.mxu1 %v3104_v16 }
 0x1ad   :  { %958 = vmatpush.msrb.mxu2 %v3105_v17  ;;  %978 = vmatpush.msrb.mxu3 %v3106_v18 }
 0x1ae   :  { %919 = vmatpush.msra.mxu0 %v3107_v19  ;;  %939 = vmatpush.msra.mxu1 %v3108_v20 }
 0x1af   :  { %959 = vmatpush.msrb.mxu2 %v3109_v21  ;;  %979 = vmatpush.msrb.mxu3 %v3110_v22 }
 0x1b0   :  { %920 = vmatpush.msra.mxu0 %v3111_v23  ;;  %940 = vmatpush.msra.mxu1 %v3112_v24 }
 0x1b1   :  { %960 = vmatpush.msrb.mxu2 %v3113_v25  ;;  %980 = vmatpush.msrb.mxu3 %v3114_v26 }
 0x1b2   :  { %921 = vmatpush.msra.mxu0 %v3115_v27  ;;  %941 = vmatpush.msra.mxu1 %v3116_v28 }
 0x1b3   :  { %961 = vmatpush.msrb.mxu2 %v3117_v29  ;;  %981 = vmatpush.msrb.mxu3 %v3118_v30 }
 0x1b4   :  { %922 = vmatpush.msra.mxu0 %v3119_v31  ;;  %942 = vmatpush.msra.mxu1 %v3120_v32 }
 0x1b5   :  { %962 = vmatpush.msrb.mxu2 %v3121_v33  ;;  %982 = vmatpush.msrb.mxu3 %v3122_v34 }
 0x211   :  { %v616_v38 = vpop.f32.mrf.mxu0  ;;  %v636_v39 = vpop.f32.mrf.mxu1 }
 0x212   :  { %v617_v40 = vadd.f32 %v616_v38, %v591_v36  ;;  %v637_v41 = vadd.f32 %v636_v39, %v592_v37  ;;  %v2614_v36 = vld [vmem:[#allocation9 + $0x1d0] sm:$0xff]  ;;  %v2617_v37 = vld [vmem:[#allocation9 + $0x1d8] sm:$0xff]  ;;  %v2621_v38 = vld [vmem:[#allocation9 + $0x1a8] sm:$0xff] }
 0x213   :  { %v2624_v39 = vld [vmem:[#allocation9 + $0x1b0] sm:$0xff] }
 0x214   :  { %v1613_v42 = vmul.f32 -1.442695, %v617_v40  ;;  %v1614_v43 = vmul.f32 -1.442695, %v637_v41  ;;  %v2627_v40 = vld [vmem:[#allocation9 + $0x1b8] sm:$0xff]  ;;  %v2630_v41 = vld [vmem:[#allocation9 + $0x180] sm:$0xff] }
 0x216   :  { %1675 = vpow2.f32 %v1613_v42  ;;  %v2633_v42 = vld [vmem:[#allocation9 + $0x188] sm:$0xff] }
 0x217   :  { %1677 = vpow2.f32 %v1614_v43  ;;  %v2636_v43 = vld [vmem:[#allocation9 + $0x190] sm:$0xff] }
 0x218   :  { %v676_v45 = vpop.f32.mrf.mxu3  ;;  %v656_v51 = vpop.f32.mrf.mxu2 }
 0x219   :  { %v677_v46 = vadd.f32 %v676_v45, %v594_v44  ;;  %v657_v13 = vadd.f32 %v656_v51, %v593_v8  ;;  %v2639_v44 = vld [vmem:[#allocation9 + $0x198] sm:$0xff]  ;;  %v2642_v45 = vld [vmem:[#allocation9 + $0x160] sm:$0xff]  ;;  %v2669_v8 = vld [vmem:[#allocation9 + $0x128] sm:$0xff] }
 0x21a   :  { %v2663_v51 = vld [vmem:[#allocation9 + $0x158] sm:$0xff] }
 0x21b   :  { %v1615_v47 = vmul.f32 -1.442695, %v677_v46  ;;  %v2645_v46 = vld [vmem:[#allocation9 + $0x168] sm:$0xff] }
 0x21c   :  { %v1676_v49 = vpop.eup %1675 }
 0x21d   :  { %v1678_v53 = vpop.eup %1677  ;;  %v682_v3 = vadd.f32 1.0, %v1676_v49  ;;  %1679 = vpow2.f32 %v1615_v47  ;;  %v2648_v47 = vld [vmem:[#allocation9 + $0x170] sm:$0xff]  ;;  %v2651_v49 = vld [vmem:[#allocation9 + $0x178] sm:$0xff] }
 0x21e   :  { %v701_v7 = vadd.f32 1.0, %v1678_v53  ;;  %v2654_v53 = vld [vmem:[#allocation9 + $0x140] sm:$0xff] }
 0x21f   :  { %1681 = vrcp.f32 %v682_v3  ;;  %v694_v59 = vand.u32 2147483648, %v682_v3  ;;  %v692_v6 = vand.u32 2147483647, %v682_v3  ;;  %vm688_vm11 = vweird.f32 %v682_v3 }
 0x220   :  { %1683 = vrcp.f32 %v701_v7  ;;  %v713_v55 = vand.u32 2147483648, %v701_v7  ;;  %v711_v2 = vand.u32 2147483647, %v701_v7  ;;  %vm707_vm12 = vweird.f32 %v701_v7 }
 0x221   :  { %v695_v0 = vor.u32 1.1754944e-38, %v694_v59  ;;  %vm693_vm15 = vcmp.eq.f32.partialorder %v692_v6, 8.507059e+37  ;;  %v2696_v59 = vld [vmem:[#allocation9 + $0xf0] sm:$0xff]  ;;  %v2705_v6 = vld [vmem:[#allocation9 + $0xc8] sm:$0xff] }
 0x222   :  { %v714_v16 = vor.u32 1.1754944e-38, %v713_v55  ;;  %vm712_vm0 = vcmp.eq.f32.partialorder %v711_v2, 8.507059e+37  ;;  %v2699_v55 = vld [vmem:[#allocation9 + $0xf8] sm:$0xff] }
 0x223   :  { %v1680_v63 = vpop.eup %1679  ;;  %v2711_v2 = vld [vmem:[#allocation9 + $0xd8] sm:$0xff] }
 0x224   :  { %v721_v57 = vadd.f32 1.0, %v1680_v63  ;;  %v2666_v63 = vld [vmem:[#allocation9 + $0x120] sm:$0xff]  ;;  %3124 = vst [vmem:[#allocation22_spill] sm:$0xff] %v2711_v2 }
 0x225   :  { %v1682_v9 = vpop.eup %1681 }
 0x226   :  { %v1684_v52 = vpop.eup %1683  ;;  %v684_v60 = vmul.f32 %v1682_v9, %v682_v3  ;;  %1685 = vrcp.f32 %v721_v57  ;;  %vm689_vm9 = vweird.f32 %v1682_v9  ;;  %v733_v28 = vand.u32 2147483648, %v721_v57  ;;  %v2657_v3 = vld [vmem:[#allocation9 + $0x148] sm:$0xff] }
 0x227   :  { %v703_v58 = vmul.f32 %v1684_v52, %v701_v7  ;;  %1687 = vtanh.f32 %v657_v13  ;;  %vm708_vm10 = vweird.f32 %v1684_v52  ;;  %vm690_vm13 = vmor %vm688_vm11, %vm689_vm9  ;;  %vm727_vm2 = vweird.f32 %v721_v57  ;;  %v2660_v7 = vld [vmem:[#allocation9 + $0x150] sm:$0xff]  ;;  %v2678_v13 = vld [vmem:[#allocation9 + $0x100] sm:$0xff] }
 0x228   :  { %v685_v54 = vsub.f32 1.0, %v684_v60  ;;  %vm709_vm14 = vmor %vm707_vm12, %vm708_vm10  ;;  %v731_v29 = vand.u32 2147483647, %v721_v57  ;;  %v734_v31 = vor.u32 1.1754944e-38, %v733_v28  ;;  %v2684_v60 = vld [vmem:[#allocation9 + $0x110] sm:$0xff]  ;;  %v2762_v28 = vld [vmem:[#allocation9 + $0x20] sm:$0xff] }
 0x229   :  { %v704_v5 = vsub.f32 1.0, %v703_v58  ;;  %v2687_v58 = vld [vmem:[#allocation9 + $0x118] sm:$0xff]  ;;  %3141 = vst [vmem:[#allocation38_spill] sm:$0xff] %v2762_v28 }
 0x22a   :  { %v686_v61 = vmul.f32 %v1682_v9, %v685_v54  ;;  %vm732_vm4 = vcmp.eq.f32.partialorder %v731_v29, 8.507059e+37  ;;  %v2690_v54 = vld [vmem:[#allocation9 + $0xe0] sm:$0xff]  ;;  %v2765_v29 = vld [vmem:[#allocation9 + $0x28] sm:$0xff] }
 0x22b   :  { %v705_v4 = vmul.f32 %v1684_v52, %v704_v5  ;;  %v2693_v5 = vld [vmem:[#allocation9 + $0xe8] sm:$0xff]  ;;  %3142 = vst [vmem:[#allocation35_spill] sm:$0xff] %v2765_v29 }
 0x22c   :  { %v1686_v48 = vpop.eup %1685  ;;  %v687_v56 = vadd.f32 %v1682_v9, %v686_v61  ;;  %v2702_v61 = vld [vmem:[#allocation9 + $0xc0] sm:$0xff] }
 0x22d   :  { %v706_v14 = vadd.f32 %v1684_v52, %v705_v4  ;;  %v723_v15 = vmul.f32 %v1686_v48, %v721_v57  ;;  %v1688_v18 = vpop.eup %1687  ;;  %vm728_vm1 = vweird.f32 %v1686_v48  ;;  %v2672_v57 = vld [vmem:[#allocation9 + $0x130] sm:$0xff] }
 0x22e   :  { %v691_v17 = vsel %vm690_vm13, %v1682_v9, %v687_v56  ;;  %vm729_vm3 = vmor %vm727_vm2, %vm728_vm1  ;;  %v2675_v9 = vld [vmem:[#allocation9 + $0x138] sm:$0xff]  ;;  %v2708_v4 = vld [vmem:[#allocation9 + $0xd0] sm:$0xff] }
 0x22f   :  { %v696_v19 = vsel %vm693_vm15, %v695_v0, %v691_v17  ;;  %v710_v20 = vsel %vm709_vm14, %v1684_v52, %v706_v14  ;;  %v724_v21 = vsub.f32 1.0, %v723_v15  ;;  %v2681_v52 = vld [vmem:[#allocation9 + $0x108] sm:$0xff]  ;;  %3123 = vst [vmem:[#allocation28_spill] sm:$0xff] %v2708_v4  ;;  %v2720_v0 = vld [vmem:[#allocation9 + $0xb0] sm:$0xff]  ;;  %v2723_v14 = vld [vmem:[#allocation9 + $0xb8] sm:$0xff] }
 0x230   :  { %v715_v22 = vsel %vm712_vm0, %v714_v16, %v710_v20  ;;  %v738_v23 = vmul.f32 %v1688_v18, %v696_v19  ;;  %v2717_v56 = vld [vmem:[#allocation9 + $0xa8] sm:$0xff]  ;;  %3127 = vst [vmem:[#allocation32_spill] sm:$0xff] %v2720_v0  ;;  %v2726_v15 = vld [vmem:[#allocation9 + $0x80] sm:$0xff]  ;;  %v2732_v17 = vld [vmem:[#allocation9 + $0x90] sm:$0xff] }
 0x231   :  { %v737_v24 = vmul.f32 %v715_v22, %v2523_v1  ;;  %v725_v25 = vmul.f32 %v1686_v48, %v724_v21  ;;  %v2605_v1 = vld [vmem:[#allocation9 + $0x1e8] sm:$0xff]  ;;  %3126 = vst [vmem:[#allocation21_spill] sm:$0xff] %v2717_v56  ;;  %v2735_v18 = vld [vmem:[#allocation9 + $0x98] sm:$0xff]  ;;  %v2738_v19 = vld [vmem:[#allocation9 + $0x60] sm:$0xff] }
 0x232   :  { %3128 = vst [vmem:[#allocation25_spill] sm:$0xff] %v2723_v14  ;;  %v2729_v16 = vld [vmem:[#allocation9 + $0x88] sm:$0xff]  ;;  %v2744_v21 = vld [vmem:[#allocation9 + $0x70] sm:$0xff]  ;;  %v2747_v22 = vld [vmem:[#allocation9 + $0x78] sm:$0xff] }
 0x233   :  { %v2601_v26 = vadd.f32 %v738_v23, %v737_v24  ;;  %v726_v27 = vadd.f32 %v1686_v48, %v725_v25  ;;  %3129 = vst [vmem:[#allocation26_spill] sm:$0xff] %v2726_v15  ;;  %v2741_v20 = vld [vmem:[#allocation9 + $0x68] sm:$0xff]  ;;  %v2750_v23 = vld [vmem:[#allocation9 + $0x40] sm:$0xff]  ;;  %v2756_v25 = vld [vmem:[#allocation9 + $0x50] sm:$0xff] }
 0x234   :  { %3130 = vst [vmem:[#allocation24_spill] sm:$0xff] %v2729_v16  ;;  %v2753_v24 = vld [vmem:[#allocation9 + $0x48] sm:$0xff] }
 0x235   :  { %1689 = vtanh.f32 %v2601_v26  ;;  %v730_v30 = vsel %vm729_vm3, %v1686_v48, %v726_v27  ;;  %v2714_v48 = vld [vmem:[#allocation9 + $0xa0] sm:$0xff]  ;;  %3131 = vst [vmem:[#allocation36_spill] sm:$0xff] %v2732_v17  ;;  %v2759_v27 = vld [vmem:[#allocation9 + $0x58] sm:$0xff] }
 0x236   :  { %v735_v33 = vsel %vm732_vm4, %v734_v31, %v730_v30  ;;  %3125 = vst [vmem:[#allocation23_spill] sm:$0xff] %v2714_v48  ;;  %v2768_v30 = vld [vmem:[#allocation9 + $0x30] sm:$0xff]  ;;  %v2771_v31 = vld [vmem:[#allocation9 + $0x38] sm:$0xff] }
 0x237   :  { %3132 = vst [vmem:[#allocation29_spill] sm:$0xff] %v2735_v18 }
 0x238   :  { %3133 = vst [vmem:[#allocation30_spill] sm:$0xff] %v2738_v19 }
 0x239   :  { %3134 = vst [vmem:[#allocation27_spill] sm:$0xff] %v2741_v20 }
 0x23a   :  { %3135 = vst [vmem:[#allocation39_spill] sm:$0xff] %v2744_v21 }
 0x23b   :  { %v1690_v32 = vpop.eup %1689  ;;  %3136 = vst [vmem:[#allocation33_spill] sm:$0xff] %v2747_v22 }
 0x23c   :  { %v741_v34 = vmul.f32 %v1690_v32, %v735_v33  ;;  %3137 = vst [vmem:[#allocation34_spill] sm:$0xff] %v2750_v23  ;;  %v2774_v32 = vld [vmem:[#allocation9] sm:$0xff]  ;;  %v2777_v33 = vld [vmem:[#allocation9 + $0x8] sm:$0xff] }
 0x23d   :  { %3138 = vst [vmem:[#allocation31_spill] sm:$0xff] %v2753_v24 }
 0x23e   :  { %769 = vmatmul.f32.vlgmr.msrb.gmra.mxu0 %v741_v34  ;;  %789 = vmatmul.f32.vlgmr.msrb.gmra.mxu1 %v741_v34  ;;  %3139 = vst [vmem:[#allocation42_spill] sm:$0xff] %v2756_v25 }
 0x23f   :  { %809 = vmatmul.f32.vlgmr.msra.gmra.mxu2 %v741_v34  ;;  %829 = vmatmul.f32.vlgmr.msra.gmra.mxu3 %v741_v34  ;;  %3140 = vst [vmem:[#allocation37_spill] sm:$0xff] %v2759_v27  ;;  %v2780_v34 = vld [vmem:[#allocation9 + $0x10] sm:$0xff] }
 0x240   :  { %1061 = vmatpush.msrb.mxu0 %v2526_v62  ;;  %1081 = vmatpush.msrb.mxu1 %v2605_v1  ;;  %3143 = vst [vmem:[#allocation43_spill] sm:$0xff] %v2768_v30 }
 0x241   :  { %1101 = vmatpush.msra.mxu2 %v2530_v10  ;;  %1121 = vmatpush.msra.mxu3 %v2533_v11  ;;  %3144 = vst [vmem:[#allocation40_spill] sm:$0xff] %v2771_v31 }
 0x242   :  { %1062 = vmatpush.msrb.mxu0 %v2536_v12  ;;  %1082 = vmatpush.msrb.mxu1 %v2611_v35  ;;  %3145 = vst [vmem:[#allocation41_spill] sm:$0xff] %v2774_v32 }
 0x243   :  { %1102 = vmatpush.msra.mxu2 %v2614_v36  ;;  %1122 = vmatpush.msra.mxu3 %v2617_v37  ;;  %3146 = vst [vmem:[#allocation44_spill] sm:$0xff] %v2777_v33 }
 0x244   :  { %1063 = vmatpush.msrb.mxu0 %v2542_v50  ;;  %1083 = vmatpush.msrb.mxu1 %v2621_v38  ;;  %3147 = vst [vmem:[#allocation45_spill] sm:$0xff] %v2780_v34 }
 0x245   :  { %1103 = vmatpush.msra.mxu2 %v2624_v39  ;;  %1123 = vmatpush.msra.mxu3 %v2627_v40 }
 0x246   :  { %1064 = vmatpush.msrb.mxu0 %v2630_v41  ;;  %1084 = vmatpush.msrb.mxu1 %v2633_v42 }
 0x247   :  { %1104 = vmatpush.msra.mxu2 %v2636_v43  ;;  %1124 = vmatpush.msra.mxu3 %v2639_v44 }
 0x248   :  { %1065 = vmatpush.msrb.mxu0 %v2642_v45  ;;  %1085 = vmatpush.msrb.mxu1 %v2645_v46 }
 0x249   :  { %1105 = vmatpush.msra.mxu2 %v2648_v47  ;;  %1125 = vmatpush.msra.mxu3 %v2651_v49 }
 0x24a   :  { %1066 = vmatpush.msrb.mxu0 %v2654_v53  ;;  %1086 = vmatpush.msrb.mxu1 %v2657_v3 }
 0x24b   :  { %1106 = vmatpush.msra.mxu2 %v2660_v7  ;;  %1126 = vmatpush.msra.mxu3 %v2663_v51 }
 0x24c   :  { %1067 = vmatpush.msrb.mxu0 %v2666_v63  ;;  %1087 = vmatpush.msrb.mxu1 %v2669_v8 }
 0x24d   :  { %1107 = vmatpush.msra.mxu2 %v2672_v57  ;;  %1127 = vmatpush.msra.mxu3 %v2675_v9 }
 0x24e   :  { %1068 = vmatpush.msrb.mxu0 %v2678_v13  ;;  %1088 = vmatpush.msrb.mxu1 %v2681_v52 }
 0x24f   :  { %1108 = vmatpush.msra.mxu2 %v2684_v60  ;;  %1128 = vmatpush.msra.mxu3 %v2687_v58 }
 0x250   :  { %1069 = vmatpush.msrb.mxu0 %v2690_v54  ;;  %1089 = vmatpush.msrb.mxu1 %v2693_v5 }
 0x251   :  { %1109 = vmatpush.msra.mxu2 %v2696_v59  ;;  %1129 = vmatpush.msra.mxu3 %v2699_v55 }
 0x252   :  { %1070 = vmatpush.msrb.mxu0 %v2702_v61  ;;  %1090 = vmatpush.msrb.mxu1 %v2705_v6 }
 0x253   :  { %1110 = vmatpush.msra.mxu2 %v2708_v4  ;;  %1130 = vmatpush.msra.mxu3 %v2711_v2 }
 0x254   :  { %1071 = vmatpush.msrb.mxu0 %v2714_v48  ;;  %1091 = vmatpush.msrb.mxu1 %v2717_v56 }
 0x255   :  { %1111 = vmatpush.msra.mxu2 %v2720_v0  ;;  %1131 = vmatpush.msra.mxu3 %v2723_v14 }
 0x256   :  { %1072 = vmatpush.msrb.mxu0 %v2726_v15  ;;  %1092 = vmatpush.msrb.mxu1 %v2729_v16 }
 0x257   :  { %1112 = vmatpush.msra.mxu2 %v2732_v17  ;;  %1132 = vmatpush.msra.mxu3 %v2735_v18 }
 0x258   :  { %1073 = vmatpush.msrb.mxu0 %v2738_v19  ;;  %1093 = vmatpush.msrb.mxu1 %v2741_v20 }
 0x259   :  { %1113 = vmatpush.msra.mxu2 %v2744_v21  ;;  %1133 = vmatpush.msra.mxu3 %v2747_v22 }
 0x25a   :  { %1074 = vmatpush.msrb.mxu0 %v2750_v23  ;;  %1094 = vmatpush.msrb.mxu1 %v2753_v24 }
 0x25b   :  { %1114 = vmatpush.msra.mxu2 %v2756_v25  ;;  %1134 = vmatpush.msra.mxu3 %v2759_v27 }
 0x25c   :  { %1075 = vmatpush.msrb.mxu0 %v2762_v28  ;;  %1095 = vmatpush.msrb.mxu1 %v2765_v29  ;;  %v2783_v29 = vld [vmem:[#allocation9 + $0x18] sm:$0xff] }
 0x25d   :  { %1115 = vmatpush.msra.mxu2 %v2768_v30  ;;  %1135 = vmatpush.msra.mxu3 %v2771_v31  ;;  %3148 = vst [vmem:[#allocation46_spill] sm:$0xff] %v2783_v29  ;;  %v743_v30 = vld [vmem:[#allocation2 + $0x3] ss:$8 sm:$0xf] }
 0x25e   :  { %1076 = vmatpush.msrb.mxu0 %v2774_v32  ;;  %1096 = vmatpush.msrb.mxu1 %v2777_v33  ;;  %v745_v28 = vperm.slane %v743_v30, 0  ;;  %v746_v27 = vperm.slane %v743_v30, 1  ;;  %v748_v33 = vperm.slane %v743_v30, 3  ;;  %v747_v14 = vperm.slane %v743_v30, 2 }
 0x25f   :  { %1116 = vmatpush.msra.mxu2 %v2780_v34  ;;  %1136 = vmatpush.msra.mxu3 %v2783_v29 }
 0x2bb   :  { %v770_v31 = vpop.f32.mrf.mxu0  ;;  %v790_v25 = vpop.f32.mrf.mxu1 }
 0x2bc   :  { %v771_v24 = vadd.f32 %v770_v31, %v745_v28  ;;  %v791_v23 = vadd.f32 %v790_v25, %v746_v27 }
 0x2be   :  { %v1616_v32 = vmul.f32 -1.442695, %v771_v24  ;;  %v1617_v22 = vmul.f32 -1.442695, %v791_v23 }
 0x2c0   :  { %1691 = vpow2.f32 %v1616_v32 }
 0x2c1   :  { %1693 = vpow2.f32 %v1617_v22 }
 0x2c2   :  { %v830_v21 = vpop.f32.mrf.mxu3  ;;  %v810_v16 = vpop.f32.mrf.mxu2 }
 0x2c3   :  { %v831_v20 = vadd.f32 %v830_v21, %v748_v33  ;;  %v811_v24 = vadd.f32 %v810_v16, %v747_v14 }
 0x2c5   :  { %v1618_v19 = vmul.f32 -1.442695, %v831_v20 }
 0x2c6   :  { %v1692_v34 = vpop.eup %1691 }
 0x2c7   :  { %v1694_v18 = vpop.eup %1693  ;;  %v836_v17 = vadd.f32 1.0, %v1692_v34  ;;  %1695 = vpow2.f32 %v1618_v19 }
 0x2c8   :  { %v855_v29 = vadd.f32 1.0, %v1694_v18 }
 0x2c9   :  { %1697 = vrcp.f32 %v836_v17  ;;  %v848_v20 = vand.u32 2147483648, %v836_v17  ;;  %v846_v18 = vand.u32 2147483647, %v836_v17  ;;  %vm842_vm7 = vweird.f32 %v836_v17 }
 0x2ca   :  { %1699 = vrcp.f32 %v855_v29  ;;  %v867_v32 = vand.u32 2147483648, %v855_v29  ;;  %v865_v34 = vand.u32 2147483647, %v855_v29  ;;  %vm861_vm8 = vweird.f32 %v855_v29 }
 0x2cb   :  { %v849_v14 = vor.u32 1.1754944e-38, %v848_v20  ;;  %vm847_vm11 = vcmp.eq.f32.partialorder %v846_v18, 8.507059e+37 }
 0x2cc   :  { %vm866_vm12 = vcmp.eq.f32.partialorder %v865_v34, 8.507059e+37 }
 0x2cd   :  { %v1696_v15 = vpop.eup %1695 }
 0x2ce   :  { %v875_v28 = vadd.f32 1.0, %v1696_v15 }
 0x2cf   :  { %v1698_v25 = vpop.eup %1697 }
 0x2d0   :  { %v1700_v23 = vpop.eup %1699  ;;  %v838_v27 = vmul.f32 %v1698_v25, %v836_v17  ;;  %1701 = vrcp.f32 %v875_v28  ;;  %vm843_vm5 = vweird.f32 %v1698_v25  ;;  %v887_v20 = vand.u32 2147483648, %v875_v28 }
 0x2d1   :  { %v857_v22 = vmul.f32 %v1700_v23, %v855_v29  ;;  %1703 = vtanh.f32 %v811_v24  ;;  %vm862_vm6 = vweird.f32 %v1700_v23  ;;  %vm844_vm9 = vmor %vm842_vm7, %vm843_vm5  ;;  %vm881_vm14 = vweird.f32 %v875_v28 }
 0x2d2   :  { %v839_v31 = vsub.f32 1.0, %v838_v27  ;;  %vm863_vm10 = vmor %vm861_vm8, %vm862_vm6  ;;  %v868_v27 = vor.u32 1.1754944e-38, %v867_v32  ;;  %v888_v18 = vor.u32 1.1754944e-38, %v887_v20  ;;  %v3167_v20 = vld [vmem:[#allocation38_spill] sm:$0xff] }
 0x2d3   :  { %v858_v21 = vsub.f32 1.0, %v857_v22 }
 0x2d4   :  { %v840_v33 = vmul.f32 %v1698_v25, %v839_v31 }
 0x2d5   :  { %v859_v19 = vmul.f32 %v1700_v23, %v858_v21 }
 0x2d6   :  { %v1702_v0 = vpop.eup %1701  ;;  %v841_v30 = vadd.f32 %v1698_v25, %v840_v33 }
 0x2d7   :  { %v860_v15 = vadd.f32 %v1700_v23, %v859_v19  ;;  %v877_v16 = vmul.f32 %v1702_v0, %v875_v28  ;;  %v1704_v24 = vpop.eup %1703  ;;  %vm882_vm13 = vweird.f32 %v1702_v0 }
 0x2d8   :  { %v845_v22 = vsel %vm844_vm9, %v1698_v25, %v841_v30  ;;  %v885_v25 = vand.u32 2147483647, %v875_v28  ;;  %vm883_vm15 = vmor %vm881_vm14, %vm882_vm13  ;;  %v3155_v28 = vld [vmem:[#allocation26_spill] sm:$0xff]  ;;  %v3156_v30 = vld [vmem:[#allocation24_spill] sm:$0xff] }
 0x2d9   :  { %v850_v56 = vsel %vm847_vm11, %v849_v14, %v845_v22  ;;  %v864_v31 = vsel %vm863_vm10, %v1700_v23, %v860_v15  ;;  %v878_v48 = vsub.f32 1.0, %v877_v16  ;;  %v3157_v14 = vld [vmem:[#allocation36_spill] sm:$0xff]  ;;  %v3158_v15 = vld [vmem:[#allocation29_spill] sm:$0xff]  ;;  %v3159_v16 = vld [vmem:[#allocation30_spill] sm:$0xff] }
 0x2da   :  { %v869_v21 = vsel %vm866_vm12, %v868_v27, %v864_v31  ;;  %v892_v2 = vmul.f32 %v1704_v24, %v850_v56  ;;  %vm886_vm0 = vcmp.eq.f32.partialorder %v885_v25, 8.507059e+37  ;;  %v3153_v56 = vld [vmem:[#allocation32_spill] sm:$0xff]  ;;  %v3160_v27 = vld [vmem:[#allocation27_spill] sm:$0xff]  ;;  %v3162_v24 = vld [vmem:[#allocation33_spill] sm:$0xff] }
 0x2db   :  { %v891_v4 = vmul.f32 %v869_v21, %v2601_v26  ;;  %v879_v33 = vmul.f32 %v1702_v0, %v878_v48  ;;  %v3149_v26 = vld [vmem:[#allocation28_spill] sm:$0xff]  ;;  %v3152_v48 = vld [vmem:[#allocation21_spill] sm:$0xff]  ;;  %v3161_v22 = vld [vmem:[#allocation39_spill] sm:$0xff] }
 0x2dc   :  { %v3163_v31 = vld [vmem:[#allocation34_spill] sm:$0xff]  ;;  %v3164_v21 = vld [vmem:[#allocation31_spill] sm:$0xff] }
 0x2dd   :  { %v2787_v17 = vadd.f32 %v892_v2, %v891_v4  ;;  %v880_v29 = vadd.f32 %v1702_v0, %v879_v33  ;;  %v3150_v4 = vld [vmem:[#allocation22_spill] sm:$0xff]  ;;  %v3151_v2 = vld [vmem:[#allocation23_spill] sm:$0xff] }
 0x2de   :  { %v3165_v33 = vld [vmem:[#allocation42_spill] sm:$0xff]  ;;  %v3168_v25 = vld [vmem:[#allocation35_spill] sm:$0xff] }
 0x2df   :  { %1705 = vtanh.f32 %v2787_v17  ;;  %v884_v32 = vsel %vm883_vm15, %v1702_v0, %v880_v29  ;;  %v3154_v0 = vld [vmem:[#allocation25_spill] sm:$0xff] }
 0x2e0   :  { %v889_v19 = vsel %vm886_vm0, %v888_v18, %v884_v32  ;;  %v3166_v29 = vld [vmem:[#allocation37_spill] sm:$0xff]  ;;  %v3169_v32 = vld [vmem:[#allocation43_spill] sm:$0xff]  ;;  %v3170_v18 = vld [vmem:[#allocation40_spill] sm:$0xff] }
 0x2e5   :  { %v1706_v23 = vpop.eup %1705 }
 0x2e6   :  { %v895_v34 = vmul.f32 %v1706_v23, %v889_v19  ;;  %v3171_v23 = vld [vmem:[#allocation41_spill] sm:$0xff]  ;;  %v3172_v19 = vld [vmem:[#allocation44_spill] sm:$0xff] }
 0x2e8   :  { %923 = vmatmul.f32.vlgmr.msra.gmra.mxu0 %v895_v34  ;;  %943 = vmatmul.f32.vlgmr.msra.gmra.mxu1 %v895_v34 }
 0x2e9   :  { %963 = vmatmul.f32.vlgmr.msrb.gmra.mxu2 %v895_v34  ;;  %983 = vmatmul.f32.vlgmr.msrb.gmra.mxu3 %v895_v34  ;;  %v3173_v34 = vld [vmem:[#allocation45_spill] sm:$0xff] }
 0x2ea   :  { %1215 = vmatpush.msra.mxu0 %v2526_v62  ;;  %1235 = vmatpush.msra.mxu1 %v2605_v1 }
 0x2eb   :  { %1255 = vmatpush.msrb.mxu2 %v2530_v10  ;;  %1275 = vmatpush.msrb.mxu3 %v2533_v11 }
 0x2ec   :  { %1216 = vmatpush.msra.mxu0 %v2536_v12  ;;  %1236 = vmatpush.msra.mxu1 %v2611_v35 }
 0x2ed   :  { %1256 = vmatpush.msrb.mxu2 %v2614_v36  ;;  %1276 = vmatpush.msrb.mxu3 %v2617_v37 }
 0x2ee   :  { %1217 = vmatpush.msra.mxu0 %v2542_v50  ;;  %1237 = vmatpush.msra.mxu1 %v2621_v38 }
 0x2ef   :  { %1257 = vmatpush.msrb.mxu2 %v2624_v39  ;;  %1277 = vmatpush.msrb.mxu3 %v2627_v40 }
 0x2f0   :  { %1218 = vmatpush.msra.mxu0 %v2630_v41  ;;  %1238 = vmatpush.msra.mxu1 %v2633_v42 }
 0x2f1   :  { %1258 = vmatpush.msrb.mxu2 %v2636_v43  ;;  %1278 = vmatpush.msrb.mxu3 %v2639_v44 }
 0x2f2   :  { %1219 = vmatpush.msra.mxu0 %v2642_v45  ;;  %1239 = vmatpush.msra.mxu1 %v2645_v46 }
 0x2f3   :  { %1259 = vmatpush.msrb.mxu2 %v2648_v47  ;;  %1279 = vmatpush.msrb.mxu3 %v2651_v49 }
 0x2f4   :  { %1220 = vmatpush.msra.mxu0 %v2654_v53  ;;  %1240 = vmatpush.msra.mxu1 %v2657_v3 }
 0x2f5   :  { %1260 = vmatpush.msrb.mxu2 %v2660_v7  ;;  %1280 = vmatpush.msrb.mxu3 %v2663_v51 }
 0x2f6   :  { %1221 = vmatpush.msra.mxu0 %v2666_v63  ;;  %1241 = vmatpush.msra.mxu1 %v2669_v8 }
 0x2f7   :  { %1261 = vmatpush.msrb.mxu2 %v2672_v57  ;;  %1281 = vmatpush.msrb.mxu3 %v2675_v9 }
 0x2f8   :  { %1222 = vmatpush.msra.mxu0 %v2678_v13  ;;  %1242 = vmatpush.msra.mxu1 %v2681_v52 }
 0x2f9   :  { %1262 = vmatpush.msrb.mxu2 %v2684_v60  ;;  %1282 = vmatpush.msrb.mxu3 %v2687_v58 }
 0x2fa   :  { %1223 = vmatpush.msra.mxu0 %v2690_v54  ;;  %1243 = vmatpush.msra.mxu1 %v2693_v5 }
 0x2fb   :  { %1263 = vmatpush.msrb.mxu2 %v2696_v59  ;;  %1283 = vmatpush.msrb.mxu3 %v2699_v55 }
 0x2fc   :  { %1224 = vmatpush.msra.mxu0 %v2702_v61  ;;  %1244 = vmatpush.msra.mxu1 %v2705_v6 }
 0x2fd   :  { %1264 = vmatpush.msrb.mxu2 %v3149_v26  ;;  %1284 = vmatpush.msrb.mxu3 %v3150_v4 }
 0x2fe   :  { %1225 = vmatpush.msra.mxu0 %v3151_v2  ;;  %1245 = vmatpush.msra.mxu1 %v3152_v48 }
 0x2ff   :  { %1265 = vmatpush.msrb.mxu2 %v3153_v56  ;;  %1285 = vmatpush.msrb.mxu3 %v3154_v0 }
 0x300   :  { %1226 = vmatpush.msra.mxu0 %v3155_v28  ;;  %1246 = vmatpush.msra.mxu1 %v3156_v30 }
 0x301   :  { %1266 = vmatpush.msrb.mxu2 %v3157_v14  ;;  %1286 = vmatpush.msrb.mxu3 %v3158_v15 }
 0x302   :  { %1227 = vmatpush.msra.mxu0 %v3159_v16  ;;  %1247 = vmatpush.msra.mxu1 %v3160_v27 }
 0x303   :  { %1267 = vmatpush.msrb.mxu2 %v3161_v22  ;;  %1287 = vmatpush.msrb.mxu3 %v3162_v24 }
 0x304   :  { %1228 = vmatpush.msra.mxu0 %v3163_v31  ;;  %1248 = vmatpush.msra.mxu1 %v3164_v21  ;;  %v3174_v31 = vld [vmem:[#allocation46_spill] sm:$0xff] }
 0x305   :  { %1268 = vmatpush.msrb.mxu2 %v3165_v33  ;;  %1288 = vmatpush.msrb.mxu3 %v3166_v29  ;;  %v897_v21 = vld [vmem:[#allocation2 + $0x4] ss:$8 sm:$0xf] }
 0x306   :  { %1229 = vmatpush.msra.mxu0 %v3167_v20  ;;  %1249 = vmatpush.msra.mxu1 %v3168_v25  ;;  %v899_v33 = vperm.slane %v897_v21, 0  ;;  %v900_v24 = vperm.slane %v897_v21, 1  ;;  %v901_v0 = vperm.slane %v897_v21, 2 }
 0x307   :  { %1269 = vmatpush.msrb.mxu2 %v3169_v32  ;;  %1289 = vmatpush.msrb.mxu3 %v3170_v18  ;;  %v902_v18 = vperm.slane %v897_v21, 3 }
 0x308   :  { %1230 = vmatpush.msra.mxu0 %v3171_v23  ;;  %1250 = vmatpush.msra.mxu1 %v3172_v19 }
 0x309   :  { %1270 = vmatpush.msrb.mxu2 %v3173_v34  ;;  %1290 = vmatpush.msrb.mxu3 %v3174_v31 }
 0x365   :  { %v924_v29 = vpop.f32.mrf.mxu0  ;;  %v944_v22 = vpop.f32.mrf.mxu1 }
 0x366   :  { %v925_v20 = vadd.f32 %v924_v29, %v899_v33  ;;  %v945_v27 = vadd.f32 %v944_v22, %v900_v24 }
 0x368   :  { %v1619_v25 = vmul.f32 -1.442695, %v925_v20  ;;  %v1620_v16 = vmul.f32 -1.442695, %v945_v27 }
 0x36a   :  { %1707 = vpow2.f32 %v1619_v25 }
 0x36b   :  { %1709 = vpow2.f32 %v1620_v16 }
 0x36c   :  { %v984_v32 = vpop.f32.mrf.mxu3  ;;  %v964_v30 = vpop.f32.mrf.mxu2 }
 0x36d   :  { %v985_v23 = vadd.f32 %v984_v32, %v902_v18  ;;  %v965_v24 = vadd.f32 %v964_v30, %v901_v0 }
 0x36f   :  { %v1621_v15 = vmul.f32 -1.442695, %v985_v23 }
 0x370   :  { %v1708_v19 = vpop.eup %1707 }
 0x371   :  { %v1710_v14 = vpop.eup %1709  ;;  %v990_v34 = vadd.f32 1.0, %v1708_v19  ;;  %1711 = vpow2.f32 %v1621_v15 }
 0x372   :  { %v1009_v31 = vadd.f32 1.0, %v1710_v14 }
 0x373   :  { %1713 = vrcp.f32 %v990_v34  ;;  %v1002_v32 = vand.u32 2147483648, %v990_v34  ;;  %v1000_v14 = vand.u32 2147483647, %v990_v34  ;;  %vm996_vm3 = vweird.f32 %v990_v34 }
 0x374   :  { %1715 = vrcp.f32 %v1009_v31  ;;  %v1021_v18 = vand.u32 2147483648, %v1009_v31  ;;  %v1019_v19 = vand.u32 2147483647, %v1009_v31  ;;  %vm1015_vm4 = vweird.f32 %v1009_v31 }
 0x375   :  { %v1003_v0 = vor.u32 1.1754944e-38, %v1002_v32  ;;  %vm1001_vm7 = vcmp.eq.f32.partialorder %v1000_v14, 8.507059e+37 }
 0x376   :  { %vm1020_vm8 = vcmp.eq.f32.partialorder %v1019_v19, 8.507059e+37 }
 0x377   :  { %v1712_v28 = vpop.eup %1711 }
 0x378   :  { %v1029_v33 = vadd.f32 1.0, %v1712_v28 }
 0x379   :  { %v1714_v22 = vpop.eup %1713 }
 0x37a   :  { %v1716_v27 = vpop.eup %1715  ;;  %v992_v29 = vmul.f32 %v1714_v22, %v990_v34  ;;  %1717 = vrcp.f32 %v1029_v33  ;;  %vm997_vm1 = vweird.f32 %v1714_v22  ;;  %v1041_v32 = vand.u32 2147483648, %v1029_v33 }
 0x37b   :  { %v1011_v16 = vmul.f32 %v1716_v27, %v1009_v31  ;;  %1719 = vtanh.f32 %v965_v24  ;;  %vm1016_vm2 = vweird.f32 %v1716_v27  ;;  %vm998_vm5 = vmor %vm996_vm3, %vm997_vm1  ;;  %vm1035_vm10 = vweird.f32 %v1029_v33 }
 0x37c   :  { %v993_v20 = vsub.f32 1.0, %v992_v29  ;;  %vm1017_vm6 = vmor %vm1015_vm4, %vm1016_vm2  ;;  %v1022_v29 = vor.u32 1.1754944e-38, %v1021_v18  ;;  %v1042_v14 = vor.u32 1.1754944e-38, %v1041_v32 }
 0x37d   :  { %v1012_v25 = vsub.f32 1.0, %v1011_v16 }
 0x37e   :  { %v994_v23 = vmul.f32 %v1714_v22, %v993_v20 }
 0x37f   :  { %v1013_v15 = vmul.f32 %v1716_v27, %v1012_v25 }
 0x380   :  { %v1718_v56 = vpop.eup %1717  ;;  %v995_v21 = vadd.f32 %v1714_v22, %v994_v23 }
 0x381   :  { %v1014_v28 = vadd.f32 %v1716_v27, %v1013_v15  ;;  %v1031_v30 = vmul.f32 %v1718_v56, %v1029_v33  ;;  %v1720_v24 = vpop.eup %1719  ;;  %vm1036_vm9 = vweird.f32 %v1718_v56 }
 0x382   :  { %v999_v16 = vsel %vm998_vm5, %v1714_v22, %v995_v21  ;;  %v1039_v22 = vand.u32 2147483647, %v1029_v33  ;;  %vm1037_vm11 = vmor %vm1035_vm10, %vm1036_vm9 }
 0x383   :  { %v1004_v48 = vsel %vm1001_vm7, %v1003_v0, %v999_v16  ;;  %v1018_v20 = vsel %vm1017_vm6, %v1716_v27, %v1014_v28  ;;  %v1032_v2 = vsub.f32 1.0, %v1031_v30 }
 0x384   :  { %v1023_v25 = vsel %vm1020_vm8, %v1022_v29, %v1018_v20  ;;  %v1046_v4 = vmul.f32 %v1720_v24, %v1004_v48  ;;  %vm1040_vm12 = vcmp.eq.f32.partialorder %v1039_v22, 8.507059e+37 }
 0x385   :  { %v1045_v26 = vmul.f32 %v1023_v25, %v2787_v17  ;;  %v1033_v23 = vmul.f32 %v1718_v56, %v1032_v2 }
 0x387   :  { %v2855_v34 = vadd.f32 %v1046_v4, %v1045_v26  ;;  %v1034_v31 = vadd.f32 %v1718_v56, %v1033_v23 }
 0x389   :  { %1721 = vtanh.f32 %v2855_v34  ;;  %v1038_v18 = vsel %vm1037_vm11, %v1718_v56, %v1034_v31 }
 0x38a   :  { %v1043_v15 = vsel %vm1040_vm12, %v1042_v14, %v1038_v18 }
 0x38f   :  { %v1722_v27 = vpop.eup %1721 }
 0x390   :  { %v1049_v19 = vmul.f32 %v1722_v27, %v1043_v15 }
 0x392   :  { %1077 = vmatmul.f32.vlgmr.msrb.gmra.mxu0 %v1049_v19  ;;  %1097 = vmatmul.f32.vlgmr.msrb.gmra.mxu1 %v1049_v19 }
 0x393   :  { %1117 = vmatmul.f32.vlgmr.msra.gmra.mxu2 %v1049_v19  ;;  %1137 = vmatmul.f32.vlgmr.msra.gmra.mxu3 %v1049_v19 }
 0x394   :  { %1369 = vmatpush.msrb.mxu0 %v2526_v62  ;;  %1389 = vmatpush.msrb.mxu1 %v2605_v1  ;;  %v3175_v62 = vld [vmem:[#allocation28_spill] sm:$0xff]  ;;  %v3180_v1 = vld [vmem:[#allocation25_spill] sm:$0xff] }
 0x395   :  { %1409 = vmatpush.msra.mxu2 %v2530_v10  ;;  %1429 = vmatpush.msra.mxu3 %v2533_v11  ;;  %v3176_v10 = vld [vmem:[#allocation22_spill] sm:$0xff]  ;;  %v3177_v11 = vld [vmem:[#allocation23_spill] sm:$0xff] }
 0x396   :  { %1370 = vmatpush.msrb.mxu0 %v2536_v12  ;;  %1390 = vmatpush.msrb.mxu1 %v2611_v35  ;;  %v3178_v12 = vld [vmem:[#allocation21_spill] sm:$0xff]  ;;  %v3181_v35 = vld [vmem:[#allocation26_spill] sm:$0xff] }
 0x397   :  { %1410 = vmatpush.msra.mxu2 %v2614_v36  ;;  %1430 = vmatpush.msra.mxu3 %v2617_v37  ;;  %v3182_v36 = vld [vmem:[#allocation24_spill] sm:$0xff] }
 0x398   :  { %1371 = vmatpush.msrb.mxu0 %v2542_v50  ;;  %1391 = vmatpush.msrb.mxu1 %v2621_v38  ;;  %v3179_v50 = vld [vmem:[#allocation32_spill] sm:$0xff]  ;;  %v3184_v38 = vld [vmem:[#allocation29_spill] sm:$0xff] }
 0x399   :  { %1411 = vmatpush.msra.mxu2 %v2624_v39  ;;  %1431 = vmatpush.msra.mxu3 %v2627_v40  ;;  %v3183_v37 = vld [vmem:[#allocation36_spill] sm:$0xff]  ;;  %v3185_v39 = vld [vmem:[#allocation30_spill] sm:$0xff]  ;;  %v3186_v40 = vld [vmem:[#allocation27_spill] sm:$0xff] }
 0x39a   :  { %1372 = vmatpush.msrb.mxu0 %v2630_v41  ;;  %1392 = vmatpush.msrb.mxu1 %v2633_v42  ;;  %v3187_v41 = vld [vmem:[#allocation39_spill] sm:$0xff]  ;;  %v3188_v42 = vld [vmem:[#allocation33_spill] sm:$0xff] }
 0x39b   :  { %1412 = vmatpush.msra.mxu2 %v2636_v43  ;;  %1432 = vmatpush.msra.mxu3 %v2639_v44  ;;  %v3189_v43 = vld [vmem:[#allocation34_spill] sm:$0xff]  ;;  %v3190_v44 = vld [vmem:[#allocation31_spill] sm:$0xff] }
 0x39c   :  { %1373 = vmatpush.msrb.mxu0 %v2642_v45  ;;  %1393 = vmatpush.msrb.mxu1 %v2645_v46  ;;  %v3191_v45 = vld [vmem:[#allocation42_spill] sm:$0xff]  ;;  %v3192_v46 = vld [vmem:[#allocation37_spill] sm:$0xff] }
 0x39d   :  { %1413 = vmatpush.msra.mxu2 %v2648_v47  ;;  %1433 = vmatpush.msra.mxu3 %v2651_v49  ;;  %v3193_v47 = vld [vmem:[#allocation38_spill] sm:$0xff]  ;;  %v3194_v49 = vld [vmem:[#allocation35_spill] sm:$0xff] }
 0x39e   :  { %1374 = vmatpush.msrb.mxu0 %v2654_v53  ;;  %1394 = vmatpush.msrb.mxu1 %v2657_v3  ;;  %v3195_v53 = vld [vmem:[#allocation43_spill] sm:$0xff]  ;;  %v3196_v3 = vld [vmem:[#allocation40_spill] sm:$0xff] }
 0x39f   :  { %1414 = vmatpush.msra.mxu2 %v2660_v7  ;;  %1434 = vmatpush.msra.mxu3 %v2663_v51  ;;  %v3197_v7 = vld [vmem:[#allocation41_spill] sm:$0xff]  ;;  %v3198_v51 = vld [vmem:[#allocation44_spill] sm:$0xff] }
 0x3a0   :  { %1375 = vmatpush.msrb.mxu0 %v2666_v63  ;;  %1395 = vmatpush.msrb.mxu1 %v2669_v8  ;;  %v3199_v63 = vld [vmem:[#allocation45_spill] sm:$0xff]  ;;  %v3200_v8 = vld [vmem:[#allocation46_spill] sm:$0xff] }
 0x3a1   :  { %1415 = vmatpush.msra.mxu2 %v2672_v57  ;;  %1435 = vmatpush.msra.mxu3 %v2675_v9  ;;  %v1051_v57 = vld [vmem:[#allocation2 + $0x5] ss:$8 sm:$0xf] }
 0x3a2   :  { %1376 = vmatpush.msrb.mxu0 %v2678_v13  ;;  %1396 = vmatpush.msrb.mxu1 %v2681_v52  ;;  %v1053_v9 = vperm.slane %v1051_v57, 0  ;;  %v1054_v13 = vperm.slane %v1051_v57, 1  ;;  %v1055_v21 = vperm.slane %v1051_v57, 2 }
 0x3a3   :  { %1416 = vmatpush.msra.mxu2 %v2684_v60  ;;  %1436 = vmatpush.msra.mxu3 %v2687_v58 }
 0x3a4   :  { %1377 = vmatpush.msrb.mxu0 %v2690_v54  ;;  %1397 = vmatpush.msrb.mxu1 %v2693_v5 }
 0x3a5   :  { %1417 = vmatpush.msra.mxu2 %v2696_v59  ;;  %1437 = vmatpush.msra.mxu3 %v2699_v55  ;;  %v1056_v55 = vperm.slane %v1051_v57, 3 }
 0x3a6   :  { %1378 = vmatpush.msrb.mxu0 %v2702_v61  ;;  %1398 = vmatpush.msrb.mxu1 %v2705_v6 }
 0x3a7   :  { %1418 = vmatpush.msra.mxu2 %v3175_v62  ;;  %1438 = vmatpush.msra.mxu3 %v3176_v10 }
 0x3a8   :  { %1379 = vmatpush.msrb.mxu0 %v3177_v11  ;;  %1399 = vmatpush.msrb.mxu1 %v3178_v12 }
 0x3a9   :  { %1419 = vmatpush.msra.mxu2 %v3179_v50  ;;  %1439 = vmatpush.msra.mxu3 %v3180_v1 }
 0x3aa   :  { %1380 = vmatpush.msrb.mxu0 %v3181_v35  ;;  %1400 = vmatpush.msrb.mxu1 %v3182_v36 }
 0x3ab   :  { %1420 = vmatpush.msra.mxu2 %v3183_v37  ;;  %1440 = vmatpush.msra.mxu3 %v3184_v38 }
 0x3ac   :  { %1381 = vmatpush.msrb.mxu0 %v3185_v39  ;;  %1401 = vmatpush.msrb.mxu1 %v3186_v40 }
 0x3ad   :  { %1421 = vmatpush.msra.mxu2 %v3187_v41  ;;  %1441 = vmatpush.msra.mxu3 %v3188_v42 }
 0x3ae   :  { %1382 = vmatpush.msrb.mxu0 %v3189_v43  ;;  %1402 = vmatpush.msrb.mxu1 %v3190_v44 }
 0x3af   :  { %1422 = vmatpush.msra.mxu2 %v3191_v45  ;;  %1442 = vmatpush.msra.mxu3 %v3192_v46 }
 0x3b0   :  { %1383 = vmatpush.msrb.mxu0 %v3193_v47  ;;  %1403 = vmatpush.msrb.mxu1 %v3194_v49 }
 0x3b1   :  { %1423 = vmatpush.msra.mxu2 %v3195_v53  ;;  %1443 = vmatpush.msra.mxu3 %v3196_v3 }
 0x3b2   :  { %1384 = vmatpush.msrb.mxu0 %v3197_v7  ;;  %1404 = vmatpush.msrb.mxu1 %v3198_v51 }
 0x3b3   :  { %1424 = vmatpush.msra.mxu2 %v3199_v63  ;;  %1444 = vmatpush.msra.mxu3 %v3200_v8 }
 0x40f   :  { %v1078_v52 = vpop.f32.mrf.mxu0  ;;  %v1098_v60 = vpop.f32.mrf.mxu1 }
 0x410   :  { %v1079_v58 = vadd.f32 %v1078_v52, %v1053_v9  ;;  %v1099_v54 = vadd.f32 %v1098_v60, %v1054_v13 }
 0x412   :  { %v1622_v5 = vmul.f32 -1.442695, %v1079_v58  ;;  %v1623_v59 = vmul.f32 -1.442695, %v1099_v54 }
 0x414   :  { %1723 = vpow2.f32 %v1622_v5 }
 0x415   :  { %1725 = vpow2.f32 %v1623_v59 }
 0x416   :  { %v1138_v61 = vpop.f32.mrf.mxu3  ;;  %v1118_v56 = vpop.f32.mrf.mxu2 }
 0x417   :  { %v1139_v6 = vadd.f32 %v1138_v61, %v1056_v55  ;;  %v1119_v30 = vadd.f32 %v1118_v56, %v1055_v21 }
 0x419   :  { %v1624_v17 = vmul.f32 -1.442695, %v1139_v6 }
 0x41a   :  { %v1724_v26 = vpop.eup %1723 }
 0x41b   :  { %v1726_v4 = vpop.eup %1725  ;;  %v1144_v2 = vadd.f32 1.0, %v1724_v26  ;;  %1727 = vpow2.f32 %v1624_v17 }
 0x41c   :  { %v1163_v48 = vadd.f32 1.0, %v1726_v4 }
 0x41d   :  { %1729 = vrcp.f32 %v1144_v2  ;;  %v1156_v23 = vand.u32 2147483648, %v1144_v2  ;;  %v1154_v22 = vand.u32 2147483647, %v1144_v2  ;;  %vm1150_vm15 = vweird.f32 %v1144_v2 }
 0x41e   :  { %1731 = vrcp.f32 %v1163_v48  ;;  %v1175_v31 = vand.u32 2147483648, %v1163_v48  ;;  %v1173_v14 = vand.u32 2147483647, %v1163_v48  ;;  %vm1169_vm0 = vweird.f32 %v1163_v48 }
 0x41f   :  { %v1157_v19 = vor.u32 1.1754944e-38, %v1156_v23  ;;  %vm1155_vm3 = vcmp.eq.f32.partialorder %v1154_v22, 8.507059e+37 }
 0x420   :  { %v1176_v11 = vor.u32 1.1754944e-38, %v1175_v31  ;;  %vm1174_vm4 = vcmp.eq.f32.partialorder %v1173_v14, 8.507059e+37 }
 0x421   :  { %v1728_v33 = vpop.eup %1727 }
 0x422   :  { %v1183_v0 = vadd.f32 1.0, %v1728_v33 }
 0x423   :  { %v1730_v28 = vpop.eup %1729 }
 0x424   :  { %v1732_v29 = vpop.eup %1731  ;;  %v1146_v16 = vmul.f32 %v1730_v28, %v1144_v2  ;;  %1733 = vrcp.f32 %v1183_v0  ;;  %vm1151_vm13 = vweird.f32 %v1730_v28  ;;  %v1195_v43 = vand.u32 2147483648, %v1183_v0 }
 0x425   :  { %v1165_v24 = vmul.f32 %v1732_v29, %v1163_v48  ;;  %1735 = vtanh.f32 %v1119_v30  ;;  %vm1170_vm14 = vweird.f32 %v1732_v29  ;;  %vm1152_vm1 = vmor %vm1150_vm15, %vm1151_vm13  ;;  %vm1189_vm6 = vweird.f32 %v1183_v0 }
 0x426   :  { %v1147_v20 = vsub.f32 1.0, %v1146_v16  ;;  %vm1171_vm2 = vmor %vm1169_vm0, %vm1170_vm14  ;;  %v1193_v44 = vand.u32 2147483647, %v1183_v0  ;;  %v1196_v46 = vor.u32 1.1754944e-38, %v1195_v43 }
 0x427   :  { %v1166_v25 = vsub.f32 1.0, %v1165_v24 }
 0x428   :  { %v1148_v32 = vmul.f32 %v1730_v28, %v1147_v20  ;;  %vm1194_vm8 = vcmp.eq.f32.partialorder %v1193_v44, 8.507059e+37 }
 0x429   :  { %v1167_v18 = vmul.f32 %v1732_v29, %v1166_v25 }
 0x42a   :  { %v1734_v27 = vpop.eup %1733  ;;  %v1149_v15 = vadd.f32 %v1730_v28, %v1148_v32 }
 0x42b   :  { %v1168_v62 = vadd.f32 %v1732_v29, %v1167_v18  ;;  %v1185_v10 = vmul.f32 %v1734_v27, %v1183_v0  ;;  %v1736_v50 = vpop.eup %1735  ;;  %vm1190_vm5 = vweird.f32 %v1734_v27 }
 0x42c   :  { %v1153_v12 = vsel %vm1152_vm1, %v1730_v28, %v1149_v15  ;;  %vm1191_vm7 = vmor %vm1189_vm6, %vm1190_vm5 }
 0x42d   :  { %v1158_v1 = vsel %vm1155_vm3, %v1157_v19, %v1153_v12  ;;  %v1172_v35 = vsel %vm1171_vm2, %v1732_v29, %v1168_v62  ;;  %v1186_v36 = vsub.f32 1.0, %v1185_v10 }
 0x42e   :  { %v1177_v37 = vsel %vm1174_vm4, %v1176_v11, %v1172_v35  ;;  %v1200_v38 = vmul.f32 %v1736_v50, %v1158_v1 }
 0x42f   :  { %v1199_v39 = vmul.f32 %v1177_v37, %v2855_v34  ;;  %v1187_v40 = vmul.f32 %v1734_v27, %v1186_v36  ;;  %v1205_v34 = vld [vmem:[#allocation2 + $0x6] ss:$8 sm:$0xf] }
 0x430   :  { %v1207_v3 = vperm.slane %v1205_v34, 0  ;;  %v1208_v7 = vperm.slane %v1205_v34, 1  ;;  %v1210_v52 = vperm.slane %v1205_v34, 3  ;;  %v1209_v26 = vperm.slane %v1205_v34, 2 }
 0x431   :  { %v2923_v41 = vadd.f32 %v1200_v38, %v1199_v39  ;;  %v1188_v42 = vadd.f32 %v1734_v27, %v1187_v40  ;;  %v1359_v34 = vld [vmem:[#allocation2 + $0x7] ss:$8 sm:$0xf] }
 0x433   :  { %1737 = vtanh.f32 %v2923_v41  ;;  %v1192_v45 = vsel %vm1191_vm7, %v1734_v27, %v1188_v42 }
 0x434   :  { %v1197_v49 = vsel %vm1194_vm8, %v1196_v46, %v1192_v45  ;;  %v1526_v45 = vld [vmem:[#allocation11 + $0x70] sm:$0xff]  ;;  %v1525_v46 = vld [vmem:[#allocation11 + $0x68] sm:$0xff] }
 0x439   :  { %v1738_v47 = vpop.eup %1737 }
 0x43a   :  { %v1203_v53 = vmul.f32 %v1738_v47, %v1197_v49  ;;  %v1524_v47 = vld [vmem:[#allocation11 + $0x60] sm:$0xff]  ;;  %v1523_v49 = vld [vmem:[#allocation11 + $0x58] sm:$0xff] }
 0x43c   :  { %1231 = vmatmul.f32.vlgmr.msra.gmra.mxu0 %v1203_v53  ;;  %1251 = vmatmul.f32.vlgmr.msra.gmra.mxu1 %v1203_v53 }
 0x43d   :  { %1271 = vmatmul.f32.vlgmr.msrb.gmra.mxu2 %v1203_v53  ;;  %1291 = vmatmul.f32.vlgmr.msrb.gmra.mxu3 %v1203_v53  ;;  %v1522_v53 = vld [vmem:[#allocation11 + $0x50] sm:$0xff] }
 0x4b9   :  { %v1232_v51 = vpop.f32.mrf.mxu0  ;;  %v1252_v63 = vpop.f32.mrf.mxu1 }
 0x4ba   :  { %v1233_v8 = vadd.f32 %v1232_v51, %v1207_v3  ;;  %v1253_v57 = vadd.f32 %v1252_v63, %v1208_v7  ;;  %v1521_v3 = vld [vmem:[#allocation11 + $0x48] sm:$0xff]  ;;  %v1520_v7 = vld [vmem:[#allocation11 + $0x40] sm:$0xff]  ;;  %v1361_v51 = vperm.slane %v1359_v34, 0  ;;  %v1362_v63 = vperm.slane %v1359_v34, 1 }
 0x4bc   :  { %v1625_v9 = vmul.f32 -1.442695, %v1233_v8  ;;  %v1626_v13 = vmul.f32 -1.442695, %v1253_v57 }
 0x4be   :  { %1739 = vpow2.f32 %v1625_v9  ;;  %v1519_v9 = vld [vmem:[#allocation11 + $0x38] sm:$0xff] }
 0x4bf   :  { %1741 = vpow2.f32 %v1626_v13 }
 0x4c0   :  { %v1292_v60 = vpop.f32.mrf.mxu3  ;;  %v1272_v6 = vpop.f32.mrf.mxu2 }
 0x4c1   :  { %v1293_v58 = vadd.f32 %v1292_v60, %v1210_v52  ;;  %v1273_v48 = vadd.f32 %v1272_v6, %v1209_v26  ;;  %v1518_v60 = vld [vmem:[#allocation11 + $0x30] sm:$0xff] }
 0x4c2   :  { %v1514_v26 = vld [vmem:[#allocation11 + $0x10] sm:$0xff] }
 0x4c3   :  { %v1627_v54 = vmul.f32 -1.442695, %v1293_v58 }
 0x4c4   :  { %v1740_v5 = vpop.eup %1739 }
 0x4c5   :  { %v1742_v59 = vpop.eup %1741  ;;  %v1298_v55 = vadd.f32 1.0, %v1740_v5  ;;  %1743 = vpow2.f32 %v1627_v54  ;;  %v1517_v5 = vld [vmem:[#allocation11 + $0x28] sm:$0xff] }
 0x4c6   :  { %v1317_v61 = vadd.f32 1.0, %v1742_v59  ;;  %v1516_v59 = vld [vmem:[#allocation11 + $0x20] sm:$0xff] }
 0x4c7   :  { %1745 = vrcp.f32 %v1298_v55  ;;  %v1310_v30 = vand.u32 2147483648, %v1298_v55  ;;  %v1308_v24 = vand.u32 2147483647, %v1298_v55  ;;  %vm1304_vm11 = vweird.f32 %v1298_v55 }
 0x4c8   :  { %1747 = vrcp.f32 %v1317_v61  ;;  %v1329_v29 = vand.u32 2147483648, %v1317_v61  ;;  %v1327_v25 = vand.u32 2147483647, %v1317_v61  ;;  %vm1323_vm12 = vweird.f32 %v1317_v61 }
 0x4c9   :  { %v1311_v32 = vor.u32 1.1754944e-38, %v1310_v30  ;;  %vm1309_vm15 = vcmp.eq.f32.partialorder %v1308_v24, 8.507059e+37 }
 0x4ca   :  { %v1330_v14 = vor.u32 1.1754944e-38, %v1329_v29  ;;  %vm1328_vm0 = vcmp.eq.f32.partialorder %v1327_v25, 8.507059e+37  ;;  %v1363_v29 = vperm.slane %v1359_v34, 2 }
 0x4cb   :  { %v1744_v17 = vpop.eup %1743 }
 0x4cc   :  { %v1337_v4 = vadd.f32 1.0, %v1744_v17 }
 0x4cd   :  { %v1746_v2 = vpop.eup %1745 }
 0x4ce   :  { %v1748_v56 = vpop.eup %1747  ;;  %v1300_v33 = vmul.f32 %v1746_v2, %v1298_v55  ;;  %1749 = vrcp.f32 %v1337_v4  ;;  %vm1305_vm9 = vweird.f32 %v1746_v2  ;;  %v1349_v37 = vand.u32 2147483648, %v1337_v4 }
 0x4cf   :  { %v1319_v21 = vmul.f32 %v1748_v56, %v1317_v61  ;;  %1751 = vtanh.f32 %v1273_v48  ;;  %vm1324_vm10 = vweird.f32 %v1748_v56  ;;  %vm1306_vm13 = vmor %vm1304_vm11, %vm1305_vm9  ;;  %vm1343_vm2 = vweird.f32 %v1337_v4  ;;  %v1515_v61 = vld [vmem:[#allocation11 + $0x18] sm:$0xff] }
 0x4d0   :  { %v1301_v0 = vsub.f32 1.0, %v1300_v33  ;;  %vm1325_vm14 = vmor %vm1323_vm12, %vm1324_vm10  ;;  %v1347_v38 = vand.u32 2147483647, %v1337_v4  ;;  %v1350_v40 = vor.u32 1.1754944e-38, %v1349_v37  ;;  %v1364_v55 = vperm.slane %v1359_v34, 3 }
 0x4d1   :  { %v1320_v28 = vsub.f32 1.0, %v1319_v21  ;;  %v1512_v21 = vld [vmem:[#allocation11] sm:$0xff] }
 0x4d2   :  { %v1302_v16 = vmul.f32 %v1746_v2, %v1301_v0  ;;  %vm1348_vm4 = vcmp.eq.f32.partialorder %v1347_v38, 8.507059e+37 }
 0x4d3   :  { %v1321_v20 = vmul.f32 %v1748_v56, %v1320_v28 }
 0x4d4   :  { %v1750_v23 = vpop.eup %1749  ;;  %v1303_v31 = vadd.f32 %v1746_v2, %v1302_v16 }
 0x4d5   :  { %v1322_v22 = vadd.f32 %v1748_v56, %v1321_v20  ;;  %v1339_v18 = vmul.f32 %v1750_v23, %v1337_v4  ;;  %v1752_v15 = vpop.eup %1751  ;;  %vm1344_vm1 = vweird.f32 %v1750_v23 }
 0x4d6   :  { %v1307_v27 = vsel %vm1306_vm13, %v1746_v2, %v1303_v31  ;;  %vm1345_vm3 = vmor %vm1343_vm2, %vm1344_vm1  ;;  %v1513_v2 = vld [vmem:[#allocation11 + $0x8] sm:$0xff] }
 0x4d7   :  { %v1312_v19 = vsel %vm1309_vm15, %v1311_v32, %v1307_v27  ;;  %v1326_v62 = vsel %vm1325_vm14, %v1748_v56, %v1322_v22  ;;  %v1340_v10 = vsub.f32 1.0, %v1339_v18 }
 0x4d8   :  { %v1331_v11 = vsel %vm1328_vm0, %v1330_v14, %v1326_v62  ;;  %v1354_v12 = vmul.f32 %v1752_v15, %v1312_v19 }
 0x4d9   :  { %v1353_v50 = vmul.f32 %v1331_v11, %v2923_v41  ;;  %v1341_v1 = vmul.f32 %v1750_v23, %v1340_v10  ;;  %v1527_v41 = vld [vmem:[#allocation11 + $0x78] sm:$0xff] }
 0x4da   :  { %1529 = vmatpush.msra.mxu0 %v1527_v41 }
 0x4db   :  { %v2927_v35 = vadd.f32 %v1354_v12, %v1353_v50  ;;  %v1342_v36 = vadd.f32 %v1750_v23, %v1341_v1 }
 0x4dc   :  { %1530 = vmatpush.msra.mxu0 %v1526_v45 }
 0x4dd   :  { %1753 = vtanh.f32 %v2927_v35  ;;  %v1346_v39 = vsel %vm1345_vm3, %v1750_v23, %v1342_v36 }
 0x4de   :  { %v1351_v43 = vsel %vm1348_vm4, %v1350_v40, %v1346_v39  ;;  %1531 = vmatpush.msra.mxu0 %v1525_v46 }
 0x4e0   :  { %1532 = vmatpush.msra.mxu0 %v1524_v47 }
 0x4e2   :  { %1533 = vmatpush.msra.mxu0 %v1523_v49 }
 0x4e3   :  { %v1754_v42 = vpop.eup %1753 }
 0x4e4   :  { %v1357_v44 = vmul.f32 %v1754_v42, %v1351_v43  ;;  %1534 = vmatpush.msra.mxu0 %v1522_v53 }
 0x4e6   :  { %1385 = vmatmul.f32.vlgmr.msrb.gmra.mxu0 %v1357_v44  ;;  %1405 = vmatmul.f32.vlgmr.msrb.gmra.mxu1 %v1357_v44 }
 0x4e7   :  { %1425 = vmatmul.f32.vlgmr.msra.gmra.mxu2 %v1357_v44  ;;  %1445 = vmatmul.f32.vlgmr.msra.gmra.mxu3 %v1357_v44 }
 0x4e8   :  { %1535 = vmatpush.msra.mxu0 %v1521_v3 }
 0x4ea   :  { %1536 = vmatpush.msra.mxu0 %v1520_v7 }
 0x4ec   :  { %1537 = vmatpush.msra.mxu0 %v1519_v9 }
 0x4ee   :  { %1538 = vmatpush.msra.mxu0 %v1518_v60 }
 0x4f0   :  { %1539 = vmatpush.msra.mxu0 %v1517_v5 }
 0x4f2   :  { %1540 = vmatpush.msra.mxu0 %v1516_v59 }
 0x4f4   :  { %1541 = vmatpush.msra.mxu0 %v1515_v61 }
 0x4f6   :  { %1542 = vmatpush.msra.mxu0 %v1514_v26 }
 0x4f8   :  { %1543 = vmatpush.msra.mxu0 %v1513_v2 }
 0x4fa   :  { %1544 = vmatpush.msra.mxu0 %v1512_v21 }
 0x563   :  { %v1386_v8 = vpop.f32.mrf.mxu0  ;;  %v1406_v57 = vpop.f32.mrf.mxu1 }
 0x564   :  { %v1387_v13 = vadd.f32 %v1386_v8, %v1361_v51  ;;  %v1407_v52 = vadd.f32 %v1406_v57, %v1362_v63 }
 0x566   :  { %v1628_v58 = vmul.f32 -1.442695, %v1387_v13  ;;  %v1629_v54 = vmul.f32 -1.442695, %v1407_v52 }
 0x568   :  { %1755 = vpow2.f32 %v1628_v58 }
 0x569   :  { %1757 = vpow2.f32 %v1629_v54 }
 0x56a   :  { %v1446_v6 = vpop.f32.mrf.mxu3  ;;  %v1426_v28 = vpop.f32.mrf.mxu2 }
 0x56b   :  { %v1447_v17 = vadd.f32 %v1446_v6, %v1364_v55  ;;  %v1427_v20 = vadd.f32 %v1426_v28, %v1363_v29 }
 0x56d   :  { %v1630_v4 = vmul.f32 -1.442695, %v1447_v17 }
 0x56e   :  { %v1756_v48 = vpop.eup %1755 }
 0x56f   :  { %v1758_v56 = vpop.eup %1757  ;;  %v1452_v33 = vadd.f32 1.0, %v1756_v48  ;;  %1759 = vpow2.f32 %v1630_v4 }
 0x570   :  { %v1471_v0 = vadd.f32 1.0, %v1758_v56 }
 0x571   :  { %1761 = vrcp.f32 %v1452_v33  ;;  %v1464_v18 = vand.u32 2147483648, %v1452_v33  ;;  %v1462_v15 = vand.u32 2147483647, %v1452_v33  ;;  %vm1458_vm7 = vweird.f32 %v1452_v33 }
 0x572   :  { %1763 = vrcp.f32 %v1471_v0  ;;  %v1483_v14 = vand.u32 2147483648, %v1471_v0  ;;  %v1481_v62 = vand.u32 2147483647, %v1471_v0  ;;  %vm1477_vm8 = vweird.f32 %v1471_v0 }
 0x573   :  { %v1465_v12 = vor.u32 1.1754944e-38, %v1464_v18  ;;  %vm1463_vm11 = vcmp.eq.f32.partialorder %v1462_v15, 8.507059e+37 }
 0x574   :  { %v1484_v36 = vor.u32 1.1754944e-38, %v1483_v14  ;;  %vm1482_vm12 = vcmp.eq.f32.partialorder %v1481_v62, 8.507059e+37 }
 0x575   :  { %v1760_v30 = vpop.eup %1759 }
 0x576   :  { %v1491_v16 = vadd.f32 1.0, %v1760_v30 }
 0x577   :  { %v1762_v24 = vpop.eup %1761 }
 0x578   :  { %v1764_v25 = vpop.eup %1763  ;;  %v1454_v23 = vmul.f32 %v1762_v24, %v1452_v33  ;;  %1765 = vrcp.f32 %v1491_v16  ;;  %vm1459_vm5 = vweird.f32 %v1762_v24  ;;  %v1503_v49 = vand.u32 2147483648, %v1491_v16 }
 0x579   :  { %v1473_v31 = vmul.f32 %v1764_v25, %v1471_v0  ;;  %1767 = vtanh.f32 %v1427_v20  ;;  %vm1478_vm6 = vweird.f32 %v1764_v25  ;;  %vm1460_vm9 = vmor %vm1458_vm7, %vm1459_vm5  ;;  %vm1497_vm14 = vweird.f32 %v1491_v16 }
 0x57a   :  { %v1455_v32 = vsub.f32 1.0, %v1454_v23  ;;  %vm1479_vm10 = vmor %vm1477_vm8, %vm1478_vm6  ;;  %v1501_v53 = vand.u32 2147483647, %v1491_v16  ;;  %v1504_v3 = vor.u32 1.1754944e-38, %v1503_v49 }
 0x57b   :  { %v1474_v22 = vsub.f32 1.0, %v1473_v31 }
 0x57c   :  { %v1456_v27 = vmul.f32 %v1762_v24, %v1455_v32  ;;  %vm1502_vm0 = vcmp.eq.f32.partialorder %v1501_v53, 8.507059e+37 }
 0x57d   :  { %v1475_v19 = vmul.f32 %v1764_v25, %v1474_v22 }
 0x57e   :  { %v1766_v10 = vpop.eup %1765  ;;  %v1457_v11 = vadd.f32 %v1762_v24, %v1456_v27 }
 0x57f   :  { %v1476_v50 = vadd.f32 %v1764_v25, %v1475_v19  ;;  %v1493_v1 = vmul.f32 %v1766_v10, %v1491_v16  ;;  %v1768_v38 = vpop.eup %1767  ;;  %vm1498_vm13 = vweird.f32 %v1766_v10 }
 0x580   :  { %v1461_v37 = vsel %vm1460_vm9, %v1762_v24, %v1457_v11  ;;  %vm1499_vm15 = vmor %vm1497_vm14, %vm1498_vm13 }
 0x581   :  { %v1466_v39 = vsel %vm1463_vm11, %v1465_v12, %v1461_v37  ;;  %v1480_v40 = vsel %vm1479_vm10, %v1764_v25, %v1476_v50  ;;  %v1494_v42 = vsub.f32 1.0, %v1493_v1 }
 0x582   :  { %v1485_v43 = vsel %vm1482_vm12, %v1484_v36, %v1480_v40  ;;  %v1508_v44 = vmul.f32 %v1768_v38, %v1466_v39 }
 0x583   :  { %v1507_v41 = vmul.f32 %v1485_v43, %v2927_v35  ;;  %v1495_v45 = vmul.f32 %v1766_v10, %v1494_v42  ;;  %v1528_v35 = vld [vmem:[%s2948_s5] sm:$0x1] }
 0x585   :  { %v1509_v46 = vadd.f32 %v1508_v44, %v1507_v41  ;;  %v1496_v47 = vadd.f32 %v1766_v10, %v1495_v45 }
 0x587   :  { %1769 = vtanh.f32 %v1509_v46  ;;  %1552 = vst [vmem:[#allocation15] sm:$0x1] %v1509_v46  ;;  %v1500_v34 = vsel %vm1499_vm15, %v1766_v10, %v1496_v47 }
 0x588   :  { %v1505_v51 = vsel %vm1502_vm0, %v1504_v3, %v1500_v34 }
 0x58d   :  { %v1770_v7 = vpop.eup %1769 }
 0x58e   :  { %v1511_v63 = vmul.f32 %v1770_v7, %v1505_v51 }
 0x590   :  { %1545 = vmatmul.f32.vlgmr.msra.gmra.mxu0 %v1511_v63  ;;  %1551 = vst [vmem:[#allocation13] sm:$0x1] %v1511_v63 }
 0x591   :  { %1574 = dma.vmem_to_hbm [thread:$0]  %s1570_s23, 16, %s1572_s21, [#allocation14]  }
 0x592   :  { %1585 = dma.vmem_to_hbm [thread:$0]  %s1581_s1, 16, %s1583_s26, [#allocation14]  }
 0x60d   :  { %v1546_v8 = vpop.f32.mrf.mxu0 }
 0x60e   :  { %v1547_v57 = vadd.f32 %v1546_v8, %v1528_v35 }
 0x610   :  { %v1549_v9 = vmax.f32 %v1547_v57, 0.0 }
 0x612   :  { %1550 = vst [vmem:[#allocation12] sm:$0x1] %v1549_v9 }
 0x613   :  { %1563 = dma.vmem_to_hbm [thread:$0]  %s1559_s30, 16, %s1561_s12, [#allocation5]  }
 0x614   :  { %2033 = dma.done.wait [#allocation5], 16  }
 0x615   :  { %2034 = vsyncadd [#allocation5], 4294967280 }
 0x616   :  { %2035 = dma.done.wait [#allocation14], 32  }
 0x617   :  { %2036 = vsyncadd [#allocation14], 4294967264 }
 0x618   :  { %1598 = vsyncpa [#allocation4], 1 }
 0x619   :  { %1599 = vsyncpa [#allocation7], 1 }
 0x61a   :  { %1600 = vsyncpa [#allocation10], 1 }
 0x61b   :  { %1601 = vsyncpa [#allocation5], 1 }
 0x61c   :  { %1602 = vsyncpa [#allocation14], 1 }

</bundles_post_ra>
